<compile_context>
chip_gen: v5e
topology: v5e:2x2
jax: 0.10.0
libtpu: 0.0.40
codegen_flags: <defaults>
</compile_context>

<pallas_src>
import jax
import jax.numpy as jnp
from jax import lax
from jax.experimental import pallas as pl
from jax.experimental.pallas import tpu as pltpu

C_OUT = 32
IMG = 28
POOL = 14                    # pooled spatial size
S = POOL * POOL              # 196 pooled spatial positions
GRP = 4                      # spatial positions packed per 128-lane row
ROWS = S // GRP              # 49 rows of real data per (sample, phase)
ROWS_PAD = 56                # padded to a multiple of 8 sublanes
PH = 4                       # 2x2 pool phases
LANES = GRP * C_OUT          # 128
TAPS = 9 * GRP               # 36 (9 conv taps x 4 packed spatial slots)
FEAT = C_OUT * S             # 6272 real flat features
FEAT_PAD = ROWS_PAD * LANES  # 7168 padded flat features
HID = 128
NCLS = 10
OUT_PAD = 128                # lane-dense MLP output width


# ------- Kernel A: conv3x3(pad=1) + bias + ReLU + maxpool2x2 (one MXU matmul) -------
def conv_pool_kernel(cols_ref, wbig_ref, bias_ref, out_ref):
    # cols_ref: (B*4*56, 36) f32  phase-stacked im2col rows (rows 49..55 zero)
    # wbig_ref: (36, 128)    f32  block-structured conv weights (resident)
    # bias_ref: (1, 1, 128)  f32  conv bias tiled x4 along lanes (resident)
    # out_ref:  (B, 56, 128) bf16 pooled activations, lane-dense (flat = s*32+c)
    b = out_ref.shape[0]
    # Single matmul covering all B samples and all 4 pool phases of this block.
    y = jnp.dot(cols_ref[...], wbig_ref[...],
                preferred_element_type=jnp.float32)            # (B*224, 128)
    y = y.reshape(b, PH, ROWS_PAD, LANES)                      # aligned split (56 % 8 == 0)
    # 2x2 max-pool as a tree max over the 4 phases (bias/ReLU commute with max).
    m = jnp.maximum(jnp.maximum(y[:, 0], y[:, 1]),
                    jnp.maximum(y[:, 2], y[:, 3]))             # (B, 56, 128)
    out_ref[...] = jnp.maximum(m + bias_ref[...], 0.0).astype(out_ref.dtype)


# ------- Kernel B: fc1 + ReLU + fc2 (fused MLP, bf16 operands on fc1, f32 accum) -------
def mlp_kernel(x_ref, w1_ref, b1_ref, w2_ref, b2_ref, o_ref):
    # x_ref: (TM, 7168) bf16; w1_ref: (7168, 128) bf16 (resident)
    # b1_ref: (1, 128) f32;   w2_ref: (128, 128) f32 (cols 10..127 zero)
    # b2_ref: (1, 128) f32;   o_ref: (TM, 128) f32 (lane-dense, unmasked stores)
    h = jnp.dot(x_ref[...], w1_ref[...], preferred_element_type=jnp.float32)
    h = jnp.maximum(h + b1_ref[...], 0.0)
    o_ref[...] = jnp.dot(h, w2_ref[...],
                         preferred_element_type=jnp.float32) + b2_ref[...]


def prepare_params(params):
    """One-time parameter preprocessing (kept OUT of the jitted hot path)."""
    wc, bc, w1, b1, w2, b2 = [p.astype(jnp.float32) for p in params]
    # wmat[t, c] = wc[c, 0, dy, dx], t = dy*3 + dx
    wmat = jnp.transpose(wc[:, 0], (1, 2, 0)).reshape(9, C_OUT)          # (9, 32)
    # wbig[t*4 + m, p*32 + c] = wmat[t, c] * (m == p)  -> conv as one matmul
    wbig = jnp.einsum('tc,mp->tmpc', wmat,
                      jnp.eye(GRP, dtype=jnp.float32)).reshape(TAPS, LANES)
    bias_tile = jnp.tile(bc, GRP).reshape(1, 1, LANES)                   # (1,1,128)
    # fc1 weight permuted to the kernel's flatten order (row = s*32 + c),
    # zero-padded for the 49->56 row padding (rows 6272..7167 are zero).
    w1p = jnp.transpose(w1.reshape(HID, C_OUT, S), (2, 1, 0)).reshape(FEAT, HID)
    w1p = jnp.pad(w1p, ((0, FEAT_PAD - FEAT), (0, 0)))                   # (7168, 128)
    # fc2 zero-padded to 128 output lanes -> unmasked (TM, 128) stores.
    w2p = jnp.pad(w2.T, ((0, 0), (0, OUT_PAD - NCLS)))                   # (128, 128)
    b2p = jnp.pad(b2, (0, OUT_PAD - NCLS)).reshape(1, OUT_PAD)
    return (wbig, bias_tile,
            w1p.astype(jnp.bfloat16), b1.reshape(1, HID),
            w2p, b2p)


@jax.jit
def cnn_forward(x, prep):
    wbig, bias_tile, w1p, b1r, w2p, b2p = prep
    N = x.shape[0]
    xs = x[:, 0].astype(jnp.float32)                          # (N, 28, 28)
    xpad = jnp.pad(xs, ((0, 0), (1, 1), (1, 1)))              # (N, 30, 30)

    # Per-pool-phase im2col, 4 spatial positions packed per 128-lane row:
    #   cols[n, ph, i, t*4 + m]  with  s = i*4 + m, t = dy*3 + dx, ph = a*2 + b,
    #   value = xpad[n, 2*(s//14) + a + dy, 2*(s%14) + b + dx].
    # TODO(synk): build this inside Kernel A from xpad to kill the 9x expansion.
    phase_cols = []
    for a in range(2):
        for b in range(2):
            taps = [xpad[:, a + dy: a + dy + 2 * POOL: 2,
                            b + dx: b + dx + 2 * POOL: 2]
                    for dy in range(3) for dx in range(3)]    # 9 x (N, 14, 14)
            phase_cols.append(jnp.stack(taps, axis=-1).reshape(N, S, 9))
    cols = jnp.stack(phase_cols, axis=1)                      # (N, 4, 196, 9)
    cols = cols.reshape(N, PH, ROWS, GRP, 9)
    cols = jnp.transpose(cols, (0, 1, 2, 4, 3)).reshape(N, PH, ROWS, TAPS)
    cols = jnp.pad(cols, ((0, 0), (0, 0), (0, ROWS_PAD - ROWS), (0, 0)))
    cols = cols.reshape(N * PH * ROWS_PAD, TAPS)              # (N*224, 36)

    # ---- Kernel A: conv + ReLU + maxpool, B samples per grid step ----
    B = min(16, N)
    pooled = pl.pallas_call(
        conv_pool_kernel,
        out_shape=jax.ShapeDtypeStruct((N, ROWS_PAD, LANES), jnp.bfloat16),
        grid=(pl.cdiv(N, B),),
        in_specs=[
            pl.BlockSpec((B * PH * ROWS_PAD, TAPS), lambda n: (n, 0)),
            pl.BlockSpec((TAPS, LANES), lambda n: (0, 0)),       # resident
            pl.BlockSpec((1, 1, LANES), lambda n: (0, 0, 0)),    # resident
        ],
        out_specs=pl.BlockSpec((B, ROWS_PAD, LANES), lambda n: (n, 0, 0)),
        compiler_params=pltpu.CompilerParams(
            dimension_semantics=("parallel",)),
    )(cols, wbig, bias_tile)

    # Lane-dense (56,128) rows: flat index i*128 + m*32 + c == s*32 + c
    # -> free contiguous reshape; padded rows hit zero rows of w1p.
    flat = pooled.reshape(N, FEAT_PAD)                         # (N, 7168) bf16

    # ---- Kernel B: fc1 + ReLU + fc2, bounded M tile ----
    TM = min(256, N)
    out = pl.pallas_call(
        mlp_kernel,
        out_shape=jax.ShapeDtypeStruct((N, OUT_PAD), jnp.float32),
        grid=(pl.cdiv(N, TM),),
        in_specs=[
            pl.BlockSpec((TM, FEAT_PAD), lambda m: (m, 0)),
            pl.BlockSpec((FEAT_PAD, HID), lambda m: (0, 0)),     # resident
            pl.BlockSpec((1, HID), lambda m: (0, 0)),
            pl.BlockSpec((HID, OUT_PAD), lambda m: (0, 0)),
            pl.BlockSpec((1, OUT_PAD), lambda m: (0, 0)),
        ],
        out_specs=pl.BlockSpec((TM, OUT_PAD), lambda m: (m, 0)),
        compiler_params=pltpu.CompilerParams(
            dimension_semantics=("parallel",),
            vmem_limit_bytes=32 * 1024 * 1024),
    )(flat, w1p, b1r, w2p, b2p)
    return out[:, :NCLS]


def cnn_reference(x, params):
    wc, bc, w1, b1, w2, b2 = params
    hp = jax.lax.Precision.HIGHEST
    conv = lax.conv_general_dilated(x, wc, (1, 1), "SAME",
                                    dimension_numbers=("NCHW", "OIHW", "NCHW"),
                                    precision=hp)
    conv = jnp.maximum(conv + bc[None, :, None, None], 0.0)
    pooled = lax.reduce_window(conv, -jnp.inf, lax.max,
                               (1, 1, 2, 2), (1, 1, 2, 2), "VALID")
    flat = pooled.reshape(x.shape[0], -1)
    h = jnp.maximum(jnp.dot(flat, w1.T, precision=hp) + b1, 0.0)
    return jnp.dot(h, w2.T, precision=hp) + b2


if __name__ == "__main__":
    key = jax.random.PRNGKey(0)
    kx, kwc, kbc, kw1, kb1, kw2, kb2 = jax.random.split(key, 7)

    # fc1 = Linear(32*14*14, 128) forces 28x28 single-channel input.
    x = jax.random.normal(kx, (2, 1, IMG, IMG), jnp.float32)

    params = (
        0.2 * jax.random.normal(kwc, (C_OUT, 1, 3, 3), jnp.float32),   # conv1.weight
        0.1 * jax.random.normal(kbc, (C_OUT,), jnp.float32),           # conv1.bias
        0.02 * jax.random.normal(kw1, (HID, FEAT), jnp.float32),       # fc1.weight
        0.1 * jax.random.normal(kb1, (HID,), jnp.float32),             # fc1.bias
        0.1 * jax.random.normal(kw2, (NCLS, HID), jnp.float32),        # fc2.weight
        0.1 * jax.random.normal(kb2, (NCLS,), jnp.float32),            # fc2.bias
    )

    prep = prepare_params(params)          # one-time, outside the jitted hot path
    out = cnn_forward(x, prep)
    jax.block_until_ready(out)

    ref = cnn_reference(x, params)
    assert out.shape == (2, NCLS)
    assert jnp.allclose(out, ref, atol=1e-2, rtol=1e-2), (
        f"mismatch: max abs diff = {float(jnp.max(jnp.abs(out - ref)))}")
    print("KERNEL_OK")
</pallas_src>

<mosaic_0001>
module attributes {stable_mosaic.version = 11 : i64} {
  func.func @conv_pool_kernel(%arg0: i32, %arg1: memref<448x36xf32, #tpu.memory_space<vmem>>, %arg2: memref<36x128xf32, #tpu.memory_space<vmem>>, %arg3: memref<1x1x128xf32, #tpu.memory_space<vmem>>, %arg4: memref<2x56x128xbf16, #tpu.memory_space<vmem>>) attributes {dimension_semantics = [#tpu.dimension_semantics<parallel>], iteration_bounds = array<i64: 1>, scalar_prefetch = 0 : i64, scratch_operands = 0 : i64, tpu.core_type = #tpu.core_type<tc>, window_params = [{transform_indices = @transform_0, window_bounds = array<i64: 448, 36>}, {pipeline_mode = #tpu.pipeline_mode<synchronous>, transform_indices = @transform_1, window_bounds = array<i64: 36, 128>}, {pipeline_mode = #tpu.pipeline_mode<synchronous>, transform_indices = @transform_2, window_bounds = array<i64: 1, 1, 128>}, {transform_indices = @transform_3, window_bounds = array<i64: 2, 56, 128>}]} {
    %c0 = arith.constant 0 : index
    %c0_0 = arith.constant 0 : index
    %0 = vector.load %arg1[%c0, %c0_0] : memref<448x36xf32, #tpu.memory_space<vmem>>, vector<448x36xf32>
    %c0_1 = arith.constant 0 : index
    %c0_2 = arith.constant 0 : index
    %1 = vector.load %arg2[%c0_1, %c0_2] : memref<36x128xf32, #tpu.memory_space<vmem>>, vector<36x128xf32>
    %cst = arith.constant dense<0.000000e+00> : vector<448x128xf32>
    %2 = tpu.matmul %0, %1, %cst {dimension_numbers = #tpu.dot_dimension_numbers<[1], [0], [0], [1], [0, 0, 1, 1], [], []>} : vector<448x36xf32>, vector<36x128xf32>, vector<448x128xf32> -> vector<448x128xf32>
    %3 = vector.shape_cast %2 : vector<448x128xf32> to vector<2x4x56x128xf32>
    %4 = vector.extract_strided_slice %3 {offsets = [0, 0, 0, 0], sizes = [2, 1, 56, 128], strides = [1, 1, 1, 1]} : vector<2x4x56x128xf32> to vector<2x1x56x128xf32>
    %5 = vector.shape_cast %4 : vector<2x1x56x128xf32> to vector<2x56x128xf32>
    %6 = vector.extract_strided_slice %3 {offsets = [0, 1, 0, 0], sizes = [2, 1, 56, 128], strides = [1, 1, 1, 1]} : vector<2x4x56x128xf32> to vector<2x1x56x128xf32>
    %7 = vector.shape_cast %6 : vector<2x1x56x128xf32> to vector<2x56x128xf32>
    %8 = arith.maximumf %5, %7 : vector<2x56x128xf32>
    %9 = vector.extract_strided_slice %3 {offsets = [0, 2, 0, 0], sizes = [2, 1, 56, 128], strides = [1, 1, 1, 1]} : vector<2x4x56x128xf32> to vector<2x1x56x128xf32>
    %10 = vector.shape_cast %9 : vector<2x1x56x128xf32> to vector<2x56x128xf32>
    %11 = vector.extract_strided_slice %3 {offsets = [0, 3, 0, 0], sizes = [2, 1, 56, 128], strides = [1, 1, 1, 1]} : vector<2x4x56x128xf32> to vector<2x1x56x128xf32>
    %12 = vector.shape_cast %11 : vector<2x1x56x128xf32> to vector<2x56x128xf32>
    %13 = arith.maximumf %10, %12 : vector<2x56x128xf32>
    %14 = arith.maximumf %8, %13 : vector<2x56x128xf32>
    %c0_3 = arith.constant 0 : index
    %c0_4 = arith.constant 0 : index
    %c0_5 = arith.constant 0 : index
    %15 = vector.load %arg3[%c0_3, %c0_4, %c0_5] : memref<1x1x128xf32, #tpu.memory_space<vmem>>, vector<1x1x128xf32>
    %16 = vector.broadcast %15 : vector<1x1x128xf32> to vector<2x56x128xf32>
    %17 = arith.addf %14, %16 : vector<2x56x128xf32>
    %cst_6 = arith.constant 0.000000e+00 : f32
    %18 = vector.broadcast %cst_6 : f32 to vector<2x56x128xf32>
    %19 = arith.maximumf %17, %18 : vector<2x56x128xf32>
    %20 = arith.truncf %19 : vector<2x56x128xf32> to vector<2x56x128xbf16>
    %c0_7 = arith.constant 0 : index
    %c0_8 = arith.constant 0 : index
    %c0_9 = arith.constant 0 : index
    %21 = vector.load %arg4[%c0_7, %c0_8, %c0_9] : memref<2x56x128xbf16, #tpu.memory_space<vmem>>, vector<2x56x128xbf16>
    tpu.vector_store %arg4[%c0_7, %c0_8, %c0_9], %20 {strides = array<i32>} : memref<2x56x128xbf16, #tpu.memory_space<vmem>>, vector<2x56x128xbf16>,
    return
  }
  func.func @transform_0(%arg0: i32) -> (i32, i32) {
    %c0_i32 = arith.constant 0 : i32
    %c0_i32_0 = arith.constant 0 : i32
    return %arg0, %c0_i32 : i32, i32
  }
  func.func @transform_1(%arg0: i32) -> (i32, i32) {
    %c0_i32 = arith.constant 0 : i32
    %c0_i32_0 = arith.constant 0 : i32
    %c0_i32_1 = arith.constant 0 : i32
    return %c0_i32, %c0_i32_0 : i32, i32
  }
  func.func @transform_2(%arg0: i32) -> (i32, i32, i32) {
    %c0_i32 = arith.constant 0 : i32
    %c0_i32_0 = arith.constant 0 : i32
    %c0_i32_1 = arith.constant 0 : i32
    %c0_i32_2 = arith.constant 0 : i32
    return %c0_i32, %c0_i32_0, %c0_i32_1 : i32, i32, i32
  }
  func.func @transform_3(%arg0: i32) -> (i32, i32, i32) {
    %c0_i32 = arith.constant 0 : i32
    %c0_i32_0 = arith.constant 0 : i32
    %c0_i32_1 = arith.constant 0 : i32
    return %arg0, %c0_i32, %c0_i32_0 : i32, i32, i32
  }
}

module attributes {stable_mosaic.version = 11 : i64} {
  func.func @mlp_kernel(%arg0: i32, %arg1: memref<2x7168xbf16, #tpu.memory_space<vmem>>, %arg2: memref<7168x128xbf16, #tpu.memory_space<vmem>>, %arg3: memref<1x128xf32, #tpu.memory_space<vmem>>, %arg4: memref<128x128xf32, #tpu.memory_space<vmem>>, %arg5: memref<1x128xf32, #tpu.memory_space<vmem>>, %arg6: memref<2x128xf32, #tpu.memory_space<vmem>>) attributes {dimension_semantics = [#tpu.dimension_semantics<parallel>], iteration_bounds = array<i64: 1>, scalar_prefetch = 0 : i64, scratch_operands = 0 : i64, tpu.core_type = #tpu.core_type<tc>, window_params = [{transform_indices = @transform_0, window_bounds = array<i64: 2, 7168>}, {pipeline_mode = #tpu.pipeline_mode<synchronous>, transform_indices = @transform_1, window_bounds = array<i64: 7168, 128>}, {pipeline_mode = #tpu.pipeline_mode<synchronous>, transform_indices = @transform_2, window_bounds = array<i64: 1, 128>}, {pipeline_mode = #tpu.pipeline_mode<synchronous>, transform_indices = @transform_3, window_bounds = array<i64: 128, 128>}, {pipeline_mode = #tpu.pipeline_mode<synchronous>, transform_indices = @transform_4, window_bounds = array<i64: 1, 128>}, {transform_indices = @transform_5, window_bounds = array<i64: 2, 128>}]} {
    %c0 = arith.constant 0 : index
    %c0_0 = arith.constant 0 : index
    %0 = vector.load %arg1[%c0, %c0_0] : memref<2x7168xbf16, #tpu.memory_space<vmem>>, vector<2x7168xbf16>
    %c0_1 = arith.constant 0 : index
    %c0_2 = arith.constant 0 : index
    %1 = vector.load %arg2[%c0_1, %c0_2] : memref<7168x128xbf16, #tpu.memory_space<vmem>>, vector<7168x128xbf16>
    %cst = arith.constant dense<0.000000e+00> : vector<2x128xf32>
    %2 = tpu.matmul %0, %1, %cst {dimension_numbers = #tpu.dot_dimension_numbers<[1], [0], [0], [1], [0, 0, 1, 1], [], []>} : vector<2x7168xbf16>, vector<7168x128xbf16>, vector<2x128xf32> -> vector<2x128xf32>
    %c0_3 = arith.constant 0 : index
    %c0_4 = arith.constant 0 : index
    %3 = vector.load %arg3[%c0_3, %c0_4] : memref<1x128xf32, #tpu.memory_space<vmem>>, vector<1x128xf32>
    %4 = vector.broadcast %3 : vector<1x128xf32> to vector<2x128xf32>
    %5 = arith.addf %2, %4 : vector<2x128xf32>
    %cst_5 = arith.constant 0.000000e+00 : f32
    %6 = vector.broadcast %cst_5 : f32 to vector<2x128xf32>
    %7 = arith.maximumf %5, %6 : vector<2x128xf32>
    %c0_6 = arith.constant 0 : index
    %c0_7 = arith.constant 0 : index
    %8 = vector.load %arg4[%c0_6, %c0_7] : memref<128x128xf32, #tpu.memory_space<vmem>>, vector<128x128xf32>
    %cst_8 = arith.constant dense<0.000000e+00> : vector<2x128xf32>
    %9 = tpu.matmul %7, %8, %cst_8 {dimension_numbers = #tpu.dot_dimension_numbers<[1], [0], [0], [1], [0, 0, 1, 1], [], []>} : vector<2x128xf32>, vector<128x128xf32>, vector<2x128xf32> -> vector<2x128xf32>
    %c0_9 = arith.constant 0 : index
    %c0_10 = arith.constant 0 : index
    %10 = vector.load %arg5[%c0_9, %c0_10] : memref<1x128xf32, #tpu.memory_space<vmem>>, vector<1x128xf32>
    %11 = vector.broadcast %10 : vector<1x128xf32> to vector<2x128xf32>
    %12 = arith.addf %9, %11 : vector<2x128xf32>
    %c0_11 = arith.constant 0 : index
    %c0_12 = arith.constant 0 : index
    %13 = vector.load %arg6[%c0_11, %c0_12] : memref<2x128xf32, #tpu.memory_space<vmem>>, vector<2x128xf32>
    tpu.vector_store %arg6[%c0_11, %c0_12], %12 {strides = array<i32>} : memref<2x128xf32, #tpu.memory_space<vmem>>, vector<2x128xf32>,
    return
  }
  func.func @transform_0(%arg0: i32) -> (i32, i32) {
    %c0_i32 = arith.constant 0 : i32
    %c0_i32_0 = arith.constant 0 : i32
    return %arg0, %c0_i32 : i32, i32
  }
  func.func @transform_1(%arg0: i32) -> (i32, i32) {
    %c0_i32 = arith.constant 0 : i32
    %c0_i32_0 = arith.constant 0 : i32
    %c0_i32_1 = arith.constant 0 : i32
    return %c0_i32, %c0_i32_0 : i32, i32
  }
  func.func @transform_2(%arg0: i32) -> (i32, i32) {
    %c0_i32 = arith.constant 0 : i32
    %c0_i32_0 = arith.constant 0 : i32
    %c0_i32_1 = arith.constant 0 : i32
    return %c0_i32, %c0_i32_0 : i32, i32
  }
  func.func @transform_3(%arg0: i32) -> (i32, i32) {
    %c0_i32 = arith.constant 0 : i32
    %c0_i32_0 = arith.constant 0 : i32
    %c0_i32_1 = arith.constant 0 : i32
    return %c0_i32, %c0_i32_0 : i32, i32
  }
  func.func @transform_4(%arg0: i32) -> (i32, i32) {
    %c0_i32 = arith.constant 0 : i32
    %c0_i32_0 = arith.constant 0 : i32
    %c0_i32_1 = arith.constant 0 : i32
    return %c0_i32, %c0_i32_0 : i32, i32
  }
  func.func @transform_5(%arg0: i32) -> (i32, i32) {
    %c0_i32 = arith.constant 0 : i32
    %c0_i32_0 = arith.constant 0 : i32
    return %arg0, %c0_i32 : i32, i32
  }
}

</mosaic_0001>

<bundles_post_ra>
// kernel: cnn_forward.2
= control target key start
LH: loop header
LB: loop body
LE: loop exit
PB: predicated region body
PF: predicated region fallthrough
CT: control target
= control target key end

     0   :  { %vm244_vm0 = vcmask 1043456   ;;  %vm75_vm1 = vcmask 293888   ;;  %s997_s1 = inlined_call_operand.vmem [shape: f32[36,128], index: 1, kind: input, shape index: {}]   ;;  %s998_s0 = inlined_call_operand.vmem [shape: f32[448,36], index: 0, kind: input, shape index: {}]   ;;  %s999_s2 = inlined_call_operand.vmem [shape: f32[1,1,128], index: 2, kind: input, shape index: {}]   ;;  %s1000_s3 = inlined_call_operand.vmem [shape: bf16[2,56,128], index: 3, kind: output, shape index: {}]  }
   0x1   :  { %v74_v0 = vld [vmem:[%s997_s1 + $0x20] sm:$0xf]  ;;  %v73_v1 = vld [vmem:[%s997_s1 + $0x18] sm:$0xff]  ;;  %v72_v2 = vld [vmem:[%s997_s1 + $0x10] sm:$0xff] }
   0x2   :  { %539 = vmatpush.msk.msra.mxu0 %vm244_vm0, %v74_v0  ;;  %637 = vmatpush.msk.msra.mxu1 %vm244_vm0, %v74_v0  ;;  %v71_v3 = vld [vmem:[%s997_s1 + $0x8] sm:$0xff]  ;;  %v70_v4 = vld [vmem:[%s997_s1] sm:$0xff]  ;;  %v28_v6 = vld [vmem:[%s998_s0 + $0x70] sm:$0xff] }
   0x3   :  { %638 = vmatpush.msk.msra.mxu2 %vm244_vm0, %v74_v0  ;;  %639 = vmatpush.msk.msra.mxu3 %vm244_vm0, %v74_v0  ;;  %v14_v5 = vld [vmem:[%s998_s0] sm:$0xff]  ;;  %v56_v8 = vld [vmem:[%s998_s0 + $0x150] sm:$0xff]  ;;  %v15_v9 = vld [vmem:[%s998_s0 + $0x8] sm:$0xff] }
   0x4   :  { %260 = vmatpush.msra.mxu0 %v73_v1  ;;  %640 = vmatpush.msra.mxu1 %v73_v1  ;;  %v42_v7 = vld [vmem:[%s998_s0 + $0xe0] sm:$0xff]  ;;  %v29_v10 = vld [vmem:[%s998_s0 + $0x78] sm:$0xff]  ;;  %v43_v11 = vld [vmem:[%s998_s0 + $0xe8] sm:$0xff] }
   0x5   :  { %641 = vmatpush.msra.mxu2 %v73_v1  ;;  %642 = vmatpush.msra.mxu3 %v73_v1  ;;  %v57_v12 = vld [vmem:[%s998_s0 + $0x158] sm:$0xff]  ;;  %v16_v13 = vld [vmem:[%s998_s0 + $0x10] sm:$0xff]  ;;  %v30_v14 = vld [vmem:[%s998_s0 + $0x80] sm:$0xff] }
   0x6   :  { %261 = vmatpush.msra.mxu0 %v72_v2  ;;  %643 = vmatpush.msra.mxu1 %v72_v2  ;;  %v44_v15 = vld [vmem:[%s998_s0 + $0xf0] sm:$0xff]  ;;  %v58_v16 = vld [vmem:[%s998_s0 + $0x160] sm:$0xff]  ;;  %v17_v17 = vld [vmem:[%s998_s0 + $0x18] sm:$0xff] }
   0x7   :  { %644 = vmatpush.msra.mxu2 %v72_v2  ;;  %645 = vmatpush.msra.mxu3 %v72_v2  ;;  %v31_v18 = vld [vmem:[%s998_s0 + $0x88] sm:$0xff]  ;;  %v45_v19 = vld [vmem:[%s998_s0 + $0xf8] sm:$0xff]  ;;  %v18_v21 = vld [vmem:[%s998_s0 + $0x20] sm:$0xff] }
   0x8   :  { %262 = vmatpush.msra.mxu0 %v71_v3  ;;  %646 = vmatpush.msra.mxu1 %v71_v3  ;;  %v59_v20 = vld [vmem:[%s998_s0 + $0x168] sm:$0xff]  ;;  %v32_v22 = vld [vmem:[%s998_s0 + $0x90] sm:$0xff]  ;;  %v46_v23 = vld [vmem:[%s998_s0 + $0x100] sm:$0xff] }
   0x9   :  { %647 = vmatpush.msra.mxu2 %v71_v3  ;;  %648 = vmatpush.msra.mxu3 %v71_v3  ;;  %v60_v24 = vld [vmem:[%s998_s0 + $0x170] sm:$0xff]  ;;  %v19_v25 = vld [vmem:[%s998_s0 + $0x28] sm:$0xff]  ;;  %v33_v26 = vld [vmem:[%s998_s0 + $0x98] sm:$0xff] }
   0xa   :  { %263 = vmatpush.msra.mxu0 %v70_v4  ;;  %649 = vmatpush.msra.mxu1 %v70_v4  ;;  %v47_v27 = vld [vmem:[%s998_s0 + $0x108] sm:$0xff]  ;;  %v61_v28 = vld [vmem:[%s998_s0 + $0x178] sm:$0xff]  ;;  %v20_v29 = vld [vmem:[%s998_s0 + $0x30] sm:$0xff] }
   0xb   :  { %650 = vmatpush.msra.mxu2 %v70_v4  ;;  %651 = vmatpush.msra.mxu3 %v70_v4  ;;  %v34_v30 = vld [vmem:[%s998_s0 + $0xa0] sm:$0xff]  ;;  %v48_v31 = vld [vmem:[%s998_s0 + $0x110] sm:$0xff]  ;;  %v21_v33 = vld [vmem:[%s998_s0 + $0x38] sm:$0xff] }
   0xc   :  { %540 = vmatmul.msk.f32.vlgmr.msra.gmra.mxu0 %vm75_vm1, %v14_v5  ;;  %554 = vmatmul.msk.f32.vlgmr.msra.gmra.mxu1 %vm75_vm1, %v28_v6  ;;  %v62_v32 = vld [vmem:[%s998_s0 + $0x180] sm:$0xff]  ;;  %v35_v34 = vld [vmem:[%s998_s0 + $0xa8] sm:$0xff]  ;;  %v49_v35 = vld [vmem:[%s998_s0 + $0x118] sm:$0xff] }
   0xd   :  { %568 = vmatmul.msk.f32.vlgmr.msra.gmra.mxu2 %vm75_vm1, %v42_v7  ;;  %582 = vmatmul.msk.f32.vlgmr.msra.gmra.mxu3 %vm75_vm1, %v56_v8  ;;  %v63_v36 = vld [vmem:[%s998_s0 + $0x188] sm:$0xff]  ;;  %v22_v37 = vld [vmem:[%s998_s0 + $0x40] sm:$0xff]  ;;  %v36_v38 = vld [vmem:[%s998_s0 + $0xb0] sm:$0xff] }
   0xe   :  { %v50_v39 = vld [vmem:[%s998_s0 + $0x120] sm:$0xff]  ;;  %v64_v40 = vld [vmem:[%s998_s0 + $0x190] sm:$0xff]  ;;  %v23_v41 = vld [vmem:[%s998_s0 + $0x48] sm:$0xff] }
   0xf   :  { %v37_v42 = vld [vmem:[%s998_s0 + $0xb8] sm:$0xff]  ;;  %v51_v43 = vld [vmem:[%s998_s0 + $0x128] sm:$0xff]  ;;  %v24_v45 = vld [vmem:[%s998_s0 + $0x50] sm:$0xff] }
  0x10   :  { %v65_v44 = vld [vmem:[%s998_s0 + $0x198] sm:$0xff]  ;;  %v38_v46 = vld [vmem:[%s998_s0 + $0xc0] sm:$0xff]  ;;  %v52_v47 = vld [vmem:[%s998_s0 + $0x130] sm:$0xff] }
  0x11   :  { %v66_v48 = vld [vmem:[%s998_s0 + $0x1a0] sm:$0xff]  ;;  %v25_v49 = vld [vmem:[%s998_s0 + $0x58] sm:$0xff]  ;;  %v39_v50 = vld [vmem:[%s998_s0 + $0xc8] sm:$0xff] }
  0x12   :  { %v53_v51 = vld [vmem:[%s998_s0 + $0x138] sm:$0xff]  ;;  %v67_v52 = vld [vmem:[%s998_s0 + $0x1a8] sm:$0xff]  ;;  %v26_v53 = vld [vmem:[%s998_s0 + $0x60] sm:$0xff] }
  0x13   :  { %v40_v54 = vld [vmem:[%s998_s0 + $0xd0] sm:$0xff]  ;;  %v54_v55 = vld [vmem:[%s998_s0 + $0x140] sm:$0xff]  ;;  %v27_v57 = vld [vmem:[%s998_s0 + $0x68] sm:$0xff] }
  0x14   :  { %541 = vmatmul.msk.f32.gmra.mxu0 %vm75_vm1, %v15_v9  ;;  %555 = vmatmul.msk.f32.gmra.mxu1 %vm75_vm1, %v29_v10  ;;  %v68_v56 = vld [vmem:[%s998_s0 + $0x1b0] sm:$0xff]  ;;  %v41_v58 = vld [vmem:[%s998_s0 + $0xd8] sm:$0xff]  ;;  %v55_v59 = vld [vmem:[%s998_s0 + $0x148] sm:$0xff] }
  0x15   :  { %569 = vmatmul.msk.f32.gmra.mxu2 %vm75_vm1, %v43_v11  ;;  %583 = vmatmul.msk.f32.gmra.mxu3 %vm75_vm1, %v57_v12  ;;  %v69_v60 = vld [vmem:[%s998_s0 + $0x1b8] sm:$0xff] }
  0x1c   :  { %542 = vmatmul.msk.f32.gmra.mxu0 %vm75_vm1, %v16_v13  ;;  %556 = vmatmul.msk.f32.gmra.mxu1 %vm75_vm1, %v30_v14 }
  0x1d   :  { %570 = vmatmul.msk.f32.gmra.mxu2 %vm75_vm1, %v44_v15  ;;  %584 = vmatmul.msk.f32.gmra.mxu3 %vm75_vm1, %v58_v16 }
  0x24   :  { %543 = vmatmul.msk.f32.gmra.mxu0 %vm75_vm1, %v17_v17  ;;  %557 = vmatmul.msk.f32.gmra.mxu1 %vm75_vm1, %v31_v18 }
  0x25   :  { %571 = vmatmul.msk.f32.gmra.mxu2 %vm75_vm1, %v45_v19  ;;  %585 = vmatmul.msk.f32.gmra.mxu3 %vm75_vm1, %v59_v20 }
  0x2c   :  { %544 = vmatmul.msk.f32.gmra.mxu0 %vm75_vm1, %v18_v21  ;;  %558 = vmatmul.msk.f32.gmra.mxu1 %vm75_vm1, %v32_v22 }
  0x2d   :  { %572 = vmatmul.msk.f32.gmra.mxu2 %vm75_vm1, %v46_v23  ;;  %586 = vmatmul.msk.f32.gmra.mxu3 %vm75_vm1, %v60_v24 }
  0x34   :  { %545 = vmatmul.msk.f32.gmra.mxu0 %vm75_vm1, %v19_v25  ;;  %559 = vmatmul.msk.f32.gmra.mxu1 %vm75_vm1, %v33_v26 }
  0x35   :  { %573 = vmatmul.msk.f32.gmra.mxu2 %vm75_vm1, %v47_v27  ;;  %587 = vmatmul.msk.f32.gmra.mxu3 %vm75_vm1, %v61_v28 }
  0x3c   :  { %546 = vmatmul.msk.f32.gmra.mxu0 %vm75_vm1, %v20_v29  ;;  %560 = vmatmul.msk.f32.gmra.mxu1 %vm75_vm1, %v34_v30  ;;  %v943_v30 = vld [vmem:[%s999_s2] ss:$0 sm:$0xff] }
  0x3d   :  { %574 = vmatmul.msk.f32.gmra.mxu2 %vm75_vm1, %v48_v31  ;;  %588 = vmatmul.msk.f32.gmra.mxu3 %vm75_vm1, %v62_v32 }
  0x44   :  { %547 = vmatmul.msk.f32.gmra.mxu0 %vm75_vm1, %v21_v33  ;;  %561 = vmatmul.msk.f32.gmra.mxu1 %vm75_vm1, %v35_v34 }
  0x45   :  { %575 = vmatmul.msk.f32.gmra.mxu2 %vm75_vm1, %v49_v35  ;;  %589 = vmatmul.msk.f32.gmra.mxu3 %vm75_vm1, %v63_v36 }
  0x4c   :  { %548 = vmatmul.msk.f32.gmra.mxu0 %vm75_vm1, %v22_v37  ;;  %562 = vmatmul.msk.f32.gmra.mxu1 %vm75_vm1, %v36_v38 }
  0x4d   :  { %576 = vmatmul.msk.f32.gmra.mxu2 %vm75_vm1, %v50_v39  ;;  %590 = vmatmul.msk.f32.gmra.mxu3 %vm75_vm1, %v64_v40 }
  0x54   :  { %549 = vmatmul.msk.f32.gmra.mxu0 %vm75_vm1, %v23_v41  ;;  %563 = vmatmul.msk.f32.gmra.mxu1 %vm75_vm1, %v37_v42 }
  0x55   :  { %577 = vmatmul.msk.f32.gmra.mxu2 %vm75_vm1, %v51_v43  ;;  %591 = vmatmul.msk.f32.gmra.mxu3 %vm75_vm1, %v65_v44 }
  0x5c   :  { %550 = vmatmul.msk.f32.gmra.mxu0 %vm75_vm1, %v24_v45  ;;  %564 = vmatmul.msk.f32.gmra.mxu1 %vm75_vm1, %v38_v46 }
  0x5d   :  { %578 = vmatmul.msk.f32.gmra.mxu2 %vm75_vm1, %v52_v47  ;;  %592 = vmatmul.msk.f32.gmra.mxu3 %vm75_vm1, %v66_v48 }
  0x64   :  { %551 = vmatmul.msk.f32.gmra.mxu0 %vm75_vm1, %v25_v49  ;;  %565 = vmatmul.msk.f32.gmra.mxu1 %vm75_vm1, %v39_v50 }
  0x65   :  { %579 = vmatmul.msk.f32.gmra.mxu2 %vm75_vm1, %v53_v51  ;;  %593 = vmatmul.msk.f32.gmra.mxu3 %vm75_vm1, %v67_v52 }
  0x6c   :  { %552 = vmatmul.msk.f32.gmra.mxu0 %vm75_vm1, %v26_v53  ;;  %566 = vmatmul.msk.f32.gmra.mxu1 %vm75_vm1, %v40_v54 }
  0x6d   :  { %580 = vmatmul.msk.f32.gmra.mxu2 %vm75_vm1, %v54_v55  ;;  %594 = vmatmul.msk.f32.gmra.mxu3 %vm75_vm1, %v68_v56 }
  0x74   :  { %553 = vmatmul.msk.f32.gmra.mxu0 %vm75_vm1, %v27_v57  ;;  %567 = vmatmul.msk.f32.gmra.mxu1 %vm75_vm1, %v41_v58 }
  0x75   :  { %581 = vmatmul.msk.f32.gmra.mxu2 %vm75_vm1, %v55_v59  ;;  %595 = vmatmul.msk.f32.gmra.mxu3 %vm75_vm1, %v69_v60 }
  0x89   :  { %v265_v61 = vpop.f32.mrf.mxu0  ;;  %v307_v62 = vpop.f32.mrf.mxu1 }
  0x90   :  { %v349_v63 = vpop.f32.mrf.mxu2  ;;  %v391_v0 = vpop.f32.mrf.mxu3 }
  0x91   :  { %v268_v1 = vpop.f32.mrf.mxu0  ;;  %v310_v2 = vpop.f32.mrf.mxu1 }
  0x98   :  { %v352_v3 = vpop.f32.mrf.mxu2  ;;  %v394_v4 = vpop.f32.mrf.mxu3 }
  0x99   :  { %v271_v5 = vpop.f32.mrf.mxu0  ;;  %v313_v6 = vpop.f32.mrf.mxu1 }
  0xa0   :  { %v355_v7 = vpop.f32.mrf.mxu2  ;;  %v397_v8 = vpop.f32.mrf.mxu3 }
  0xa1   :  { %v274_v9 = vpop.f32.mrf.mxu0  ;;  %v316_v10 = vpop.f32.mrf.mxu1 }
  0xa8   :  { %v912_v11 = vpop.f32.mrf.mxu2  ;;  %v914_v12 = vpop.f32.mrf.mxu3 }
  0xa9   :  { %v916_v13 = vpop.f32.mrf.mxu0  ;;  %v918_v14 = vpop.f32.mrf.mxu1 }
  0xb0   :  { %v920_v15 = vpop.f32.mrf.mxu2  ;;  %v922_v16 = vpop.f32.mrf.mxu3 }
  0xb1   :  { %v924_v17 = vpop.f32.mrf.mxu0  ;;  %v926_v18 = vpop.f32.mrf.mxu1 }
  0xb8   :  { %v928_v19 = vpop.f32.mrf.mxu2  ;;  %v930_v20 = vpop.f32.mrf.mxu3 }
  0xb9   :  { %v932_v21 = vpop.f32.mrf.mxu0  ;;  %v934_v22 = vpop.f32.mrf.mxu1 }
  0xc0   :  { %v936_v23 = vpop.f32.mrf.mxu2  ;;  %v938_v24 = vpop.f32.mrf.mxu3 }
  0xc1   :  { %v286_v25 = vpop.f32.mrf.mxu0  ;;  %v328_v26 = vpop.f32.mrf.mxu1 }
  0xc2   :  { %v433_v27 = vmax.f32 %v265_v61, %v286_v25  ;;  %v447_v28 = vmax.f32 %v307_v62, %v328_v26 }
  0xc4   :  { %v461_v29 = vmax.f32 %v433_v27, %v447_v28 }
  0xc6   :  { %v479_v40 = vadd.f32 %v943_v30, %v461_v29 }
  0xc8   :  { %v370_v31 = vpop.f32.mrf.mxu2  ;;  %v412_v32 = vpop.f32.mrf.mxu3  ;;  %v493_v43 = vmax.f32 %v479_v40, 0.0 }
  0xc9   :  { %v440_v33 = vmax.f32 %v349_v63, %v370_v31  ;;  %v454_v34 = vmax.f32 %v391_v0, %v412_v32  ;;  %v289_v35 = vpop.f32.mrf.mxu0  ;;  %v331_v36 = vpop.f32.mrf.mxu1 }
  0xca   :  { %v434_v37 = vmax.f32 %v268_v1, %v289_v35  ;;  %v448_v38 = vmax.f32 %v310_v2, %v331_v36 }
  0xcb   :  { %v945_v39 = vmax.f32 %v440_v33, %v454_v34 }
  0xcc   :  { %v462_v41 = vmax.f32 %v434_v37, %v448_v38 }
  0xce   :  { %v480_v42 = vadd.f32 %v943_v30, %v462_v41 }
  0xd0   :  { %v494_v44 = vmax.f32 %v480_v42, 0.0  ;;  %v373_v45 = vpop.f32.mrf.mxu2  ;;  %v415_v46 = vpop.f32.mrf.mxu3 }
  0xd1   :  { %v441_v47 = vmax.f32 %v352_v3, %v373_v45  ;;  %v455_v48 = vmax.f32 %v394_v4, %v415_v46  ;;  %v292_v49 = vpop.f32.mrf.mxu0  ;;  %v334_v50 = vpop.f32.mrf.mxu1 }
  0xd2   :  { %v599_v51 = vpack.c.bf16 %v494_v44, %v493_v43  ;;  %v435_v52 = vmax.f32 %v271_v5, %v292_v49  ;;  %v449_v53 = vmax.f32 %v313_v6, %v334_v50 }
  0xd3   :  { %v469_v54 = vmax.f32 %v441_v47, %v455_v48 }
  0xd4   :  { %600 = vst [vmem:[%s1000_s3] sm:$0xff] %v599_v51   ;;  %v463_v55 = vmax.f32 %v435_v52, %v449_v53 }
  0xd5   :  { %v487_v0 = vadd.f32 %v943_v30, %v469_v54 }
  0xd6   :  { %v481_v2 = vadd.f32 %v943_v30, %v463_v55 }
  0xd7   :  { %v501_v6 = vmax.f32 %v487_v0, 0.0 }
  0xd8   :  { %v376_v56 = vpop.f32.mrf.mxu2  ;;  %v418_v57 = vpop.f32.mrf.mxu3  ;;  %v495_v26 = vmax.f32 %v481_v2, 0.0 }
  0xd9   :  { %v442_v58 = vmax.f32 %v355_v7, %v376_v56  ;;  %v456_v59 = vmax.f32 %v397_v8, %v418_v57  ;;  %v295_v60 = vpop.f32.mrf.mxu0  ;;  %v337_v61 = vpop.f32.mrf.mxu1 }
  0xda   :  { %v436_v62 = vmax.f32 %v274_v9, %v295_v60  ;;  %v450_v63 = vmax.f32 %v316_v10, %v337_v61 }
  0xdb   :  { %v470_v1 = vmax.f32 %v442_v58, %v456_v59  ;;  %v486_v59 = vadd.f32 %v943_v30, %v945_v39 }
  0xdc   :  { %v464_v3 = vmax.f32 %v436_v62, %v450_v63 }
  0xdd   :  { %v488_v4 = vadd.f32 %v943_v30, %v470_v1  ;;  %v500_v60 = vmax.f32 %v486_v59, 0.0 }
  0xde   :  { %v482_v5 = vadd.f32 %v943_v30, %v464_v3 }
  0xdf   :  { %v502_v25 = vmax.f32 %v488_v4, 0.0 }
  0xe0   :  { %v496_v27 = vmax.f32 %v482_v5, 0.0  ;;  %v379_v7 = vpop.f32.mrf.mxu2  ;;  %v421_v8 = vpop.f32.mrf.mxu3 }
  0xe1   :  { %v619_v28 = vpack.c.bf16 %v502_v25, %v501_v6  ;;  %v443_v9 = vmax.f32 %v912_v11, %v379_v7  ;;  %v457_v10 = vmax.f32 %v914_v12, %v421_v8  ;;  %v298_v29 = vpop.f32.mrf.mxu0  ;;  %v340_v31 = vpop.f32.mrf.mxu1 }
  0xe2   :  { %v604_v32 = vpack.c.bf16 %v496_v27, %v495_v26  ;;  %v437_v33 = vmax.f32 %v916_v13, %v298_v29  ;;  %v451_v34 = vmax.f32 %v918_v14, %v340_v31 }
  0xe3   :  { %634 = vst [vmem:[%s1000_s3 + $0x20] sm:$0xff] %v619_v28   ;;  %v471_v35 = vmax.f32 %v443_v9, %v457_v10 }
  0xe4   :  { %631 = vst [vmem:[%s1000_s3 + $0x8] sm:$0xff] %v604_v32   ;;  %v465_v36 = vmax.f32 %v437_v33, %v451_v34 }
  0xe5   :  { %v489_v42 = vadd.f32 %v943_v30, %v471_v35 }
  0xe6   :  { %v483_v44 = vadd.f32 %v943_v30, %v465_v36 }
  0xe7   :  { %v503_v48 = vmax.f32 %v489_v42, 0.0 }
  0xe8   :  { %v382_v11 = vpop.f32.mrf.mxu2  ;;  %v424_v37 = vpop.f32.mrf.mxu3  ;;  %v497_v49 = vmax.f32 %v483_v44, 0.0 }
  0xe9   :  { %v444_v12 = vmax.f32 %v920_v15, %v382_v11  ;;  %v458_v38 = vmax.f32 %v922_v16, %v424_v37  ;;  %v301_v40 = vpop.f32.mrf.mxu0  ;;  %v343_v13 = vpop.f32.mrf.mxu1 }
  0xea   :  { %v438_v14 = vmax.f32 %v924_v17, %v301_v40  ;;  %v452_v41 = vmax.f32 %v926_v18, %v343_v13 }
  0xeb   :  { %v472_v43 = vmax.f32 %v444_v12, %v458_v38 }
  0xec   :  { %v466_v45 = vmax.f32 %v438_v14, %v452_v41 }
  0xed   :  { %v490_v46 = vadd.f32 %v943_v30, %v472_v43 }
  0xee   :  { %v484_v47 = vadd.f32 %v943_v30, %v466_v45 }
  0xef   :  { %v504_v15 = vmax.f32 %v490_v46, 0.0 }
  0xf0   :  { %v498_v16 = vmax.f32 %v484_v47, 0.0  ;;  %v385_v50 = vpop.f32.mrf.mxu2  ;;  %v427_v51 = vpop.f32.mrf.mxu3 }
  0xf1   :  { %v624_v52 = vpack.c.bf16 %v504_v15, %v503_v48  ;;  %v445_v17 = vmax.f32 %v928_v19, %v385_v50  ;;  %v459_v18 = vmax.f32 %v930_v20, %v427_v51  ;;  %v304_v53 = vpop.f32.mrf.mxu0  ;;  %v346_v54 = vpop.f32.mrf.mxu1 }
  0xf2   :  { %v609_v55 = vpack.c.bf16 %v498_v16, %v497_v49  ;;  %v439_v56 = vmax.f32 %v932_v21, %v304_v53  ;;  %v453_v57 = vmax.f32 %v934_v22, %v346_v54 }
  0xf3   :  { %635 = vst [vmem:[%s1000_s3 + $0x28] sm:$0xff] %v624_v52   ;;  %v473_v58 = vmax.f32 %v445_v17, %v459_v18 }
  0xf4   :  { %632 = vst [vmem:[%s1000_s3 + $0x10] sm:$0xff] %v609_v55   ;;  %v467_v19 = vmax.f32 %v439_v56, %v453_v57 }
  0xf5   :  { %v491_v1 = vadd.f32 %v943_v30, %v473_v58 }
  0xf6   :  { %v485_v20 = vadd.f32 %v943_v30, %v467_v19 }
  0xf7   :  { %v505_v3 = vmax.f32 %v491_v1, 0.0 }
  0xf8   :  { %v499_v61 = vmax.f32 %v485_v20, 0.0  ;;  %v388_v21 = vpop.f32.mrf.mxu2  ;;  %v430_v62 = vpop.f32.mrf.mxu3 }
  0xf9   :  { %v446_v22 = vmax.f32 %v936_v23, %v388_v21  ;;  %v460_v63 = vmax.f32 %v938_v24, %v430_v62 }
  0xfa   :  { %v614_v0 = vpack.c.bf16 %v500_v60, %v499_v61 }
  0xfb   :  { %v474_v2 = vmax.f32 %v446_v22, %v460_v63 }
  0xfc   :  { %633 = vst [vmem:[%s1000_s3 + $0x18] sm:$0xff] %v614_v0  }
  0xfd   :  { %v492_v39 = vadd.f32 %v943_v30, %v474_v2 }
  0xff   :  { %v506_v4 = vmax.f32 %v492_v39, 0.0 }
 0x101   :  { %v629_v5 = vpack.c.bf16 %v506_v4, %v505_v3 }
 0x103   :  { %636 = vst [vmem:[%s1000_s3 + $0x30] sm:$0xff] %v629_v5  }

// kernel: cnn_forward.3
= control target key start
LH: loop header
LB: loop body
LE: loop exit
PB: predicated region body
PF: predicated region fallthrough
CT: control target
= control target key end

     0   :  { %s8262_s0 = inlined_call_operand.vmem [shape: bf16[2,7168], index: 0, kind: input, shape index: {}]   ;;  %s8263_s1 = inlined_call_operand.vmem [shape: bf16[7168,128], index: 1, kind: input, shape index: {}]   ;;  %s8264_s2 = inlined_call_operand.vmem [shape: f32[1,128], index: 2, kind: input, shape index: {}]   ;;  %s8265_s3 = inlined_call_operand.vmem [shape: f32[128,128], index: 3, kind: input, shape index: {}]   ;;  %s8266_s4 = inlined_call_operand.vmem [shape: f32[1,128], index: 4, kind: input, shape index: {}]   ;;  %s8267_s5 = inlined_call_operand.hbm [shape: f32[2,128], index: 5, kind: output, shape index: {}]  }
   0x1   :  { %v6327_v0 = vld [vmem:[%s8263_s1 + $0x38] sm:$0xff]  ;;  %v6326_v4 = vld [vmem:[%s8263_s1 + $0x30] sm:$0xff]  ;;  %v6325_v8 = vld [vmem:[%s8263_s1 + $0x28] sm:$0xff] }
   0x2   :  { %v6335_v1 = vld [vmem:[%s8263_s1 + $0x78] sm:$0xff]  ;;  %3742 = vmatpush.bf16.msra.mxu0 %v6327_v0  ;;  %v6334_v5 = vld [vmem:[%s8263_s1 + $0x70] sm:$0xff]  ;;  %v6333_v9 = vld [vmem:[%s8263_s1 + $0x68] sm:$0xff] }
   0x3   :  { %v6343_v2 = vld [vmem:[%s8263_s1 + $0xb8] sm:$0xff]  ;;  %3755 = vmatpush.bf16.msra.mxu1 %v6335_v1  ;;  %v6342_v6 = vld [vmem:[%s8263_s1 + $0xb0] sm:$0xff]  ;;  %v6341_v10 = vld [vmem:[%s8263_s1 + $0xa8] sm:$0xff] }
   0x4   :  { %v6351_v3 = vld [vmem:[%s8263_s1 + $0xf8] sm:$0xff]  ;;  %3768 = vmatpush.bf16.msra.mxu2 %v6343_v2  ;;  %v6350_v7 = vld [vmem:[%s8263_s1 + $0xf0] sm:$0xff]  ;;  %v6349_v11 = vld [vmem:[%s8263_s1 + $0xe8] sm:$0xff] }
   0x5   :  { %3781 = vmatpush.bf16.msra.mxu3 %v6351_v3  ;;  %v6324_v12 = vld [vmem:[%s8263_s1 + $0x20] sm:$0xff]  ;;  %v6323_v16 = vld [vmem:[%s8263_s1 + $0x18] sm:$0xff]  ;;  %v6322_v20 = vld [vmem:[%s8263_s1 + $0x10] sm:$0xff] }
   0x6   :  { %3743 = vmatpush.bf16.msra.mxu0 %v6326_v4  ;;  %v6332_v13 = vld [vmem:[%s8263_s1 + $0x60] sm:$0xff]  ;;  %v6331_v17 = vld [vmem:[%s8263_s1 + $0x58] sm:$0xff]  ;;  %v6330_v21 = vld [vmem:[%s8263_s1 + $0x50] sm:$0xff] }
   0x7   :  { %3756 = vmatpush.bf16.msra.mxu1 %v6334_v5  ;;  %v6340_v14 = vld [vmem:[%s8263_s1 + $0xa0] sm:$0xff]  ;;  %v6339_v18 = vld [vmem:[%s8263_s1 + $0x98] sm:$0xff]  ;;  %v6338_v23 = vld [vmem:[%s8263_s1 + $0x90] sm:$0xff] }
   0x8   :  { %3769 = vmatpush.bf16.msra.mxu2 %v6342_v6  ;;  %v6348_v15 = vld [vmem:[%s8263_s1 + $0xe0] sm:$0xff]  ;;  %v6347_v19 = vld [vmem:[%s8263_s1 + $0xd8] sm:$0xff]  ;;  %v6346_v24 = vld [vmem:[%s8263_s1 + $0xd0] sm:$0xff] }
   0x9   :  { %3782 = vmatpush.bf16.msra.mxu3 %v6350_v7  ;;  %v21_v22 = vld [vmem:[%s8262_s0] sm:$0xff] }
   0xa   :  { %3744 = vmatpush.bf16.msra.mxu0 %v6325_v8  ;;  %929 = vst [vmem:[#allocation1] ss:$9 sm:$0xff] %v21_v22 }
   0xb   :  { %3757 = vmatpush.bf16.msra.mxu1 %v6333_v9 }
   0xc   :  { %3770 = vmatpush.bf16.msra.mxu2 %v6341_v10 }
   0xd   :  { %3783 = vmatpush.bf16.msra.mxu3 %v6349_v11 }
   0xe   :  { %3745 = vmatpush.bf16.msra.mxu0 %v6324_v12 }
   0xf   :  { %3758 = vmatpush.bf16.msra.mxu1 %v6332_v13 }
  0x10   :  { %3771 = vmatpush.bf16.msra.mxu2 %v6340_v14 }
  0x11   :  { %3784 = vmatpush.bf16.msra.mxu3 %v6348_v15 }
  0x12   :  { %3746 = vmatpush.bf16.msra.mxu0 %v6323_v16 }
  0x13   :  { %3759 = vmatpush.bf16.msra.mxu1 %v6331_v17 }
  0x14   :  { %3772 = vmatpush.bf16.msra.mxu2 %v6339_v18 }
  0x15   :  { %3785 = vmatpush.bf16.msra.mxu3 %v6347_v19 }
  0x16   :  { %10 = vsyncpa [#allocation3], 0  ;;  %3747 = vmatpush.bf16.msra.mxu0 %v6322_v20  ;;  %v6321_v25 = vld [vmem:[%s8263_s1 + $0x8] sm:$0xff]  ;;  %v6320_v29 = vld [vmem:[%s8263_s1] sm:$0xff]  ;;  %s6797_s7 = smov [#allocation2]   ;;  %s4519_s10 = sshll.u32 %s8267_s5, 4  ;;  %s4520_s10 = int_to_ptr.hbm [resolvable:$true] %s4519_s10 }
  0x17   :  { %3760 = vmatpush.bf16.msra.mxu1 %v6330_v21  ;;  %v6329_v26 = vld [vmem:[%s8263_s1 + $0x48] sm:$0xff]  ;;  %v6328_v30 = vld [vmem:[%s8263_s1 + $0x40] sm:$0xff]  ;;  %v6359_v33 = vld [vmem:[%s8263_s1 + $0x138] sm:$0xff]  ;;  %s4517_s8 = sshll.u32 %s6797_s7, 4  ;;  %s4518_s8 = int_to_ptr.vmem [resolvable:$true] %s4517_s8 }
  0x18   :  { %3773 = vmatpush.bf16.msra.mxu2 %v6338_v23  ;;  %v6337_v27 = vld [vmem:[%s8263_s1 + $0x88] sm:$0xff]  ;;  %v6336_v31 = vld [vmem:[%s8263_s1 + $0x80] sm:$0xff]  ;;  %v6367_v34 = vld [vmem:[%s8263_s1 + $0x178] sm:$0xff] }
  0x19   :  { %3786 = vmatpush.bf16.msra.mxu3 %v6346_v24  ;;  %v6345_v28 = vld [vmem:[%s8263_s1 + $0xc8] sm:$0xff]  ;;  %v6344_v32 = vld [vmem:[%s8263_s1 + $0xc0] sm:$0xff]  ;;  %v6375_v35 = vld [vmem:[%s8263_s1 + $0x1b8] sm:$0xff] }
  0x1a   :  { %3748 = vmatpush.bf16.msra.mxu0 %v6321_v25  ;;  %v6383_v36 = vld [vmem:[%s8263_s1 + $0x1f8] sm:$0xff]  ;;  %v6358_v37 = vld [vmem:[%s8263_s1 + $0x130] sm:$0xff]  ;;  %v930_v39 = vld [vmem:[#allocation1] sm:$0xff] }
  0x1b   :  { %3761 = vmatpush.bf16.msra.mxu1 %v6329_v26  ;;  %v932_v38 = vld [vmem:[#allocation1 + $0x12] sm:$0xff]  ;;  %v933_v41 = vld [vmem:[#allocation1 + $0x1b] sm:$0xff]  ;;  %v931_v42 = vld [vmem:[#allocation1 + $0x9] sm:$0xff] }
  0x1c   :  { %3774 = vmatpush.bf16.msra.mxu2 %v6337_v27  ;;  %v6366_v40 = vld [vmem:[%s8263_s1 + $0x170] sm:$0xff]  ;;  %v6357_v45 = vld [vmem:[%s8263_s1 + $0x128] sm:$0xff]  ;;  %v6356_v49 = vld [vmem:[%s8263_s1 + $0x120] sm:$0xff] }
  0x1d   :  { %3787 = vmatpush.bf16.msra.mxu3 %v6345_v28  ;;  %v6374_v43 = vld [vmem:[%s8263_s1 + $0x1b0] sm:$0xff]  ;;  %v6365_v46 = vld [vmem:[%s8263_s1 + $0x168] sm:$0xff]  ;;  %v6364_v50 = vld [vmem:[%s8263_s1 + $0x160] sm:$0xff] }
  0x1e   :  { %3749 = vmatpush.bf16.msra.mxu0 %v6320_v29  ;;  %v6382_v44 = vld [vmem:[%s8263_s1 + $0x1f0] sm:$0xff]  ;;  %v6373_v47 = vld [vmem:[%s8263_s1 + $0x1a8] sm:$0xff]  ;;  %v937_v54 = vld [vmem:[#allocation1 + $0x3f] sm:$0xff] }
  0x1f   :  { %3762 = vmatpush.bf16.msra.mxu1 %v6328_v30  ;;  %v6381_v48 = vld [vmem:[%s8263_s1 + $0x1e8] sm:$0xff]  ;;  %v936_v51 = vld [vmem:[#allocation1 + $0x36] sm:$0xff]  ;;  %v6372_v56 = vld [vmem:[%s8263_s1 + $0x1a0] sm:$0xff] }
  0x20   :  { %3775 = vmatpush.bf16.msra.mxu2 %v6336_v31  ;;  %v22_v52 = vld [vmem:[%s8262_s0 + $0x8] sm:$0xff]  ;;  %v6380_v57 = vld [vmem:[%s8263_s1 + $0x1e0] sm:$0xff]  ;;  %v6355_v58 = vld [vmem:[%s8263_s1 + $0x118] sm:$0xff] }
  0x21   :  { %3788 = vmatpush.bf16.msra.mxu3 %v6344_v32  ;;  %3750 = vmatmul.bf16.vlgmr.msra.gmra.mxu0 %v930_v39  ;;  %v934_v53 = vld [vmem:[#allocation1 + $0x24] sm:$0xff]  ;;  %v935_v55 = vld [vmem:[#allocation1 + $0x2d] sm:$0xff]  ;;  %v6363_v59 = vld [vmem:[%s8263_s1 + $0x158] sm:$0xff] }
  0x22   :  { %3794 = vmatpush.bf16.msrb.mxu0 %v6359_v33  ;;  %3763 = vmatmul.bf16.vlgmr.msra.gmra.mxu1 %v931_v42  ;;  %939 = vst [vmem:[#allocation1] ss:$9 sm:$0xff] %v22_v52  ;;  %v6371_v60 = vld [vmem:[%s8263_s1 + $0x198] sm:$0xff]  ;;  %v6354_v62 = vld [vmem:[%s8263_s1 + $0x110] sm:$0xff]  ;;  %v6353_v2 = vld [vmem:[%s8263_s1 + $0x108] sm:$0xff] }
  0x23   :  { %3807 = vmatpush.bf16.msrb.mxu1 %v6367_v34  ;;  %3776 = vmatmul.bf16.vlgmr.msra.gmra.mxu2 %v932_v38  ;;  %v6379_v61 = vld [vmem:[%s8263_s1 + $0x1d8] sm:$0xff]  ;;  %v6362_v63 = vld [vmem:[%s8263_s1 + $0x150] sm:$0xff]  ;;  %v6361_v3 = vld [vmem:[%s8263_s1 + $0x148] sm:$0xff] }
  0x24   :  { %3820 = vmatpush.bf16.msrb.mxu2 %v6375_v35  ;;  %3789 = vmatmul.bf16.vlgmr.msra.gmra.mxu3 %v933_v41  ;;  %v6370_v0 = vld [vmem:[%s8263_s1 + $0x190] sm:$0xff]  ;;  %v6369_v4 = vld [vmem:[%s8263_s1 + $0x188] sm:$0xff]  ;;  %v6352_v6 = vld [vmem:[%s8263_s1 + $0x100] sm:$0xff] }
  0x25   :  { %3833 = vmatpush.bf16.msrb.mxu3 %v6383_v36  ;;  %v6378_v1 = vld [vmem:[%s8263_s1 + $0x1d0] sm:$0xff]  ;;  %v6377_v5 = vld [vmem:[%s8263_s1 + $0x1c8] sm:$0xff]  ;;  %v6360_v7 = vld [vmem:[%s8263_s1 + $0x140] sm:$0xff] }
  0x26   :  { %3795 = vmatpush.bf16.msrb.mxu0 %v6358_v37  ;;  %v6368_v8 = vld [vmem:[%s8263_s1 + $0x180] sm:$0xff]  ;;  %v6391_v10 = vld [vmem:[%s8263_s1 + $0x238] sm:$0xff]  ;;  %v6390_v14 = vld [vmem:[%s8263_s1 + $0x230] sm:$0xff] }
  0x27   :  { %3808 = vmatpush.bf16.msrb.mxu1 %v6366_v40  ;;  %v6376_v9 = vld [vmem:[%s8263_s1 + $0x1c0] sm:$0xff]  ;;  %v6399_v11 = vld [vmem:[%s8263_s1 + $0x278] sm:$0xff]  ;;  %v6398_v15 = vld [vmem:[%s8263_s1 + $0x270] sm:$0xff] }
  0x28   :  { %3821 = vmatpush.bf16.msrb.mxu2 %v6374_v43  ;;  %v6407_v12 = vld [vmem:[%s8263_s1 + $0x2b8] sm:$0xff]  ;;  %v6406_v16 = vld [vmem:[%s8263_s1 + $0x2b0] sm:$0xff]  ;;  %v6389_v18 = vld [vmem:[%s8263_s1 + $0x228] sm:$0xff] }
  0x29   :  { %3834 = vmatpush.bf16.msrb.mxu3 %v6382_v44  ;;  %v6415_v13 = vld [vmem:[%s8263_s1 + $0x2f8] sm:$0xff]  ;;  %v6414_v17 = vld [vmem:[%s8263_s1 + $0x2f0] sm:$0xff]  ;;  %v6397_v19 = vld [vmem:[%s8263_s1 + $0x268] sm:$0xff] }
  0x2a   :  { %3796 = vmatpush.bf16.msrb.mxu0 %v6357_v45  ;;  %v6405_v20 = vld [vmem:[%s8263_s1 + $0x2a8] sm:$0xff]  ;;  %v6388_v22 = vld [vmem:[%s8263_s1 + $0x220] sm:$0xff]  ;;  %v6387_v26 = vld [vmem:[%s8263_s1 + $0x218] sm:$0xff] }
  0x2b   :  { %3809 = vmatpush.bf16.msrb.mxu1 %v6365_v46  ;;  %v6413_v21 = vld [vmem:[%s8263_s1 + $0x2e8] sm:$0xff]  ;;  %v6396_v23 = vld [vmem:[%s8263_s1 + $0x260] sm:$0xff]  ;;  %v6395_v27 = vld [vmem:[%s8263_s1 + $0x258] sm:$0xff] }
  0x2c   :  { %3822 = vmatpush.bf16.msrb.mxu2 %v6373_v47  ;;  %v6404_v24 = vld [vmem:[%s8263_s1 + $0x2a0] sm:$0xff]  ;;  %v6403_v28 = vld [vmem:[%s8263_s1 + $0x298] sm:$0xff]  ;;  %v6386_v30 = vld [vmem:[%s8263_s1 + $0x210] sm:$0xff] }
  0x2d   :  { %3835 = vmatpush.bf16.msrb.mxu3 %v6381_v48  ;;  %v6412_v25 = vld [vmem:[%s8263_s1 + $0x2e0] sm:$0xff]  ;;  %v6411_v29 = vld [vmem:[%s8263_s1 + $0x2d8] sm:$0xff]  ;;  %v6394_v31 = vld [vmem:[%s8263_s1 + $0x250] sm:$0xff] }
  0x2e   :  { %3797 = vmatpush.bf16.msrb.mxu0 %v6356_v49  ;;  %v6402_v32 = vld [vmem:[%s8263_s1 + $0x290] sm:$0xff]  ;;  %v6385_v34 = vld [vmem:[%s8263_s1 + $0x208] sm:$0xff]  ;;  %v6384_v38 = vld [vmem:[%s8263_s1 + $0x200] sm:$0xff] }
  0x2f   :  { %3810 = vmatpush.bf16.msrb.mxu1 %v6364_v50  ;;  %v6410_v33 = vld [vmem:[%s8263_s1 + $0x2d0] sm:$0xff]  ;;  %v6393_v35 = vld [vmem:[%s8263_s1 + $0x248] sm:$0xff]  ;;  %v6392_v39 = vld [vmem:[%s8263_s1 + $0x240] sm:$0xff] }
  0x30   :  { %3823 = vmatpush.bf16.msrb.mxu2 %v6372_v56  ;;  %v6401_v36 = vld [vmem:[%s8263_s1 + $0x288] sm:$0xff]  ;;  %v6400_v40 = vld [vmem:[%s8263_s1 + $0x280] sm:$0xff]  ;;  %v6423_v42 = vld [vmem:[%s8263_s1 + $0x338] sm:$0xff] }
  0x31   :  { %3836 = vmatpush.bf16.msrb.mxu3 %v6380_v57  ;;  %v6409_v37 = vld [vmem:[%s8263_s1 + $0x2c8] sm:$0xff]  ;;  %v6408_v41 = vld [vmem:[%s8263_s1 + $0x2c0] sm:$0xff]  ;;  %v6431_v43 = vld [vmem:[%s8263_s1 + $0x378] sm:$0xff] }
  0x32   :  { %3798 = vmatpush.bf16.msrb.mxu0 %v6355_v58  ;;  %v6439_v44 = vld [vmem:[%s8263_s1 + $0x3b8] sm:$0xff]  ;;  %v940_v46 = vld [vmem:[#allocation1] sm:$0xff]  ;;  %v941_v48 = vld [vmem:[#allocation1 + $0x9] sm:$0xff] }
  0x33   :  { %3811 = vmatpush.bf16.msrb.mxu1 %v6363_v59  ;;  %v6447_v45 = vld [vmem:[%s8263_s1 + $0x3f8] sm:$0xff]  ;;  %v6422_v50 = vld [vmem:[%s8263_s1 + $0x330] sm:$0xff]  ;;  %v6437_v56 = vld [vmem:[%s8263_s1 + $0x3a8] sm:$0xff] }
  0x34   :  { %3824 = vmatpush.bf16.msrb.mxu2 %v6371_v60  ;;  %v942_v47 = vld [vmem:[#allocation1 + $0x12] sm:$0xff]  ;;  %v943_v49 = vld [vmem:[#allocation1 + $0x1b] sm:$0xff]  ;;  %v6445_v57 = vld [vmem:[%s8263_s1 + $0x3e8] sm:$0xff] }
  0x35   :  { %3837 = vmatpush.bf16.msrb.mxu3 %v6379_v61  ;;  %v6438_v52 = vld [vmem:[%s8263_s1 + $0x3b0] sm:$0xff]  ;;  %v6420_v58 = vld [vmem:[%s8263_s1 + $0x320] sm:$0xff] }
  0x36   :  { %3799 = vmatpush.bf16.msrb.mxu0 %v6354_v62  ;;  %v6428_v59 = vld [vmem:[%s8263_s1 + $0x360] sm:$0xff]  ;;  %v6419_v62 = vld [vmem:[%s8263_s1 + $0x318] sm:$0xff] }
  0x37   :  { %3812 = vmatpush.bf16.msrb.mxu1 %v6362_v63  ;;  %v6436_v60 = vld [vmem:[%s8263_s1 + $0x3a0] sm:$0xff]  ;;  %v6427_v63 = vld [vmem:[%s8263_s1 + $0x358] sm:$0xff] }
  0x38   :  { %3825 = vmatpush.bf16.msrb.mxu2 %v6370_v0  ;;  %v6444_v61 = vld [vmem:[%s8263_s1 + $0x3e0] sm:$0xff]  ;;  %v6435_v0 = vld [vmem:[%s8263_s1 + $0x398] sm:$0xff] }
  0x39   :  { %3838 = vmatpush.bf16.msrb.mxu3 %v6378_v1  ;;  %v6443_v1 = vld [vmem:[%s8263_s1 + $0x3d8] sm:$0xff] }
  0x3a   :  { %3800 = vmatpush.bf16.msrb.mxu0 %v6353_v2  ;;  %v6418_v2 = vld [vmem:[%s8263_s1 + $0x310] sm:$0xff] }
  0x3b   :  { %3813 = vmatpush.bf16.msrb.mxu1 %v6361_v3  ;;  %v6426_v3 = vld [vmem:[%s8263_s1 + $0x350] sm:$0xff] }
  0x3c   :  { %3826 = vmatpush.bf16.msrb.mxu2 %v6369_v4  ;;  %v6434_v4 = vld [vmem:[%s8263_s1 + $0x390] sm:$0xff] }
  0x3d   :  { %3839 = vmatpush.bf16.msrb.mxu3 %v6377_v5  ;;  %v6442_v5 = vld [vmem:[%s8263_s1 + $0x3d0] sm:$0xff] }
  0x3e   :  { %3801 = vmatpush.bf16.msrb.mxu0 %v6352_v6  ;;  %v6417_v6 = vld [vmem:[%s8263_s1 + $0x308] sm:$0xff] }
  0x3f   :  { %3814 = vmatpush.bf16.msrb.mxu1 %v6360_v7  ;;  %v6425_v7 = vld [vmem:[%s8263_s1 + $0x348] sm:$0xff] }
  0x40   :  { %3827 = vmatpush.bf16.msrb.mxu2 %v6368_v8  ;;  %v6433_v8 = vld [vmem:[%s8263_s1 + $0x388] sm:$0xff] }
  0x41   :  { %3840 = vmatpush.bf16.msrb.mxu3 %v6376_v9  ;;  %3802 = vmatmul.bf16.vlgmr.msrb.gmra.mxu0 %v934_v53  ;;  %v6446_v53 = vld [vmem:[%s8263_s1 + $0x3f0] sm:$0xff]  ;;  %v6441_v9 = vld [vmem:[%s8263_s1 + $0x3c8] sm:$0xff] }
  0x42   :  { %3846 = vmatpush.bf16.msra.mxu0 %v6391_v10  ;;  %3815 = vmatmul.bf16.vlgmr.msrb.gmra.mxu1 %v935_v55  ;;  %v6429_v55 = vld [vmem:[%s8263_s1 + $0x368] sm:$0xff] }
  0x43   :  { %3859 = vmatpush.bf16.msra.mxu1 %v6399_v11  ;;  %3828 = vmatmul.bf16.vlgmr.msrb.gmra.mxu2 %v936_v51  ;;  %v6430_v51 = vld [vmem:[%s8263_s1 + $0x370] sm:$0xff]  ;;  %v944_v10 = vld [vmem:[#allocation1 + $0x24] sm:$0xff] }
  0x44   :  { %3872 = vmatpush.bf16.msra.mxu2 %v6407_v12  ;;  %3841 = vmatmul.bf16.vlgmr.msrb.gmra.mxu3 %v937_v54  ;;  %v6421_v54 = vld [vmem:[%s8263_s1 + $0x328] sm:$0xff]  ;;  %v946_v11 = vld [vmem:[#allocation1 + $0x36] sm:$0xff] }
  0x45   :  { %3885 = vmatpush.bf16.msra.mxu3 %v6415_v13  ;;  %v945_v12 = vld [vmem:[#allocation1 + $0x2d] sm:$0xff]  ;;  %v947_v13 = vld [vmem:[#allocation1 + $0x3f] sm:$0xff] }
  0x46   :  { %3847 = vmatpush.bf16.msra.mxu0 %v6390_v14  ;;  %v23_v14 = vld [vmem:[%s8262_s0 + $0x10] sm:$0xff] }
  0x47   :  { %3860 = vmatpush.bf16.msra.mxu1 %v6398_v15  ;;  %949 = vst [vmem:[#allocation1] ss:$9 sm:$0xff] %v23_v14  ;;  %v6416_v15 = vld [vmem:[%s8263_s1 + $0x300] sm:$0xff]  ;;  %v6499_v14 = vld [vmem:[%s8263_s1 + $0x598] sm:$0xff] }
  0x48   :  { %3873 = vmatpush.bf16.msra.mxu2 %v6406_v16  ;;  %v6424_v16 = vld [vmem:[%s8263_s1 + $0x340] sm:$0xff] }
  0x49   :  { %3886 = vmatpush.bf16.msra.mxu3 %v6414_v17  ;;  %v6432_v17 = vld [vmem:[%s8263_s1 + $0x380] sm:$0xff] }
  0x4a   :  { %3848 = vmatpush.bf16.msra.mxu0 %v6389_v18  ;;  %v6440_v18 = vld [vmem:[%s8263_s1 + $0x3c0] sm:$0xff] }
  0x4b   :  { %3861 = vmatpush.bf16.msra.mxu1 %v6397_v19  ;;  %v6455_v19 = vld [vmem:[%s8263_s1 + $0x438] sm:$0xff] }
  0x4c   :  { %3874 = vmatpush.bf16.msra.mxu2 %v6405_v20  ;;  %v6463_v20 = vld [vmem:[%s8263_s1 + $0x478] sm:$0xff] }
  0x4d   :  { %3887 = vmatpush.bf16.msra.mxu3 %v6413_v21  ;;  %v6471_v21 = vld [vmem:[%s8263_s1 + $0x4b8] sm:$0xff] }
  0x4e   :  { %3849 = vmatpush.bf16.msra.mxu0 %v6388_v22  ;;  %v6479_v22 = vld [vmem:[%s8263_s1 + $0x4f8] sm:$0xff] }
  0x4f   :  { %3862 = vmatpush.bf16.msra.mxu1 %v6396_v23  ;;  %v6454_v23 = vld [vmem:[%s8263_s1 + $0x430] sm:$0xff] }
  0x50   :  { %3875 = vmatpush.bf16.msra.mxu2 %v6404_v24  ;;  %v6462_v24 = vld [vmem:[%s8263_s1 + $0x470] sm:$0xff] }
  0x51   :  { %3888 = vmatpush.bf16.msra.mxu3 %v6412_v25  ;;  %v6470_v25 = vld [vmem:[%s8263_s1 + $0x4b0] sm:$0xff] }
  0x52   :  { %3850 = vmatpush.bf16.msra.mxu0 %v6387_v26  ;;  %v6478_v26 = vld [vmem:[%s8263_s1 + $0x4f0] sm:$0xff] }
  0x53   :  { %3863 = vmatpush.bf16.msra.mxu1 %v6395_v27  ;;  %v6453_v27 = vld [vmem:[%s8263_s1 + $0x428] sm:$0xff] }
  0x54   :  { %3876 = vmatpush.bf16.msra.mxu2 %v6403_v28  ;;  %v6461_v28 = vld [vmem:[%s8263_s1 + $0x468] sm:$0xff] }
  0x55   :  { %3889 = vmatpush.bf16.msra.mxu3 %v6411_v29  ;;  %v6469_v29 = vld [vmem:[%s8263_s1 + $0x4a8] sm:$0xff] }
  0x56   :  { %3851 = vmatpush.bf16.msra.mxu0 %v6386_v30  ;;  %v6477_v30 = vld [vmem:[%s8263_s1 + $0x4e8] sm:$0xff] }
  0x57   :  { %3864 = vmatpush.bf16.msra.mxu1 %v6394_v31  ;;  %v6452_v31 = vld [vmem:[%s8263_s1 + $0x420] sm:$0xff] }
  0x58   :  { %3877 = vmatpush.bf16.msra.mxu2 %v6402_v32  ;;  %v6460_v32 = vld [vmem:[%s8263_s1 + $0x460] sm:$0xff] }
  0x59   :  { %3890 = vmatpush.bf16.msra.mxu3 %v6410_v33  ;;  %v6468_v33 = vld [vmem:[%s8263_s1 + $0x4a0] sm:$0xff] }
  0x5a   :  { %3852 = vmatpush.bf16.msra.mxu0 %v6385_v34  ;;  %v6476_v34 = vld [vmem:[%s8263_s1 + $0x4e0] sm:$0xff] }
  0x5b   :  { %3865 = vmatpush.bf16.msra.mxu1 %v6393_v35  ;;  %v6451_v35 = vld [vmem:[%s8263_s1 + $0x418] sm:$0xff] }
  0x5c   :  { %3878 = vmatpush.bf16.msra.mxu2 %v6401_v36  ;;  %v6459_v36 = vld [vmem:[%s8263_s1 + $0x458] sm:$0xff] }
  0x5d   :  { %3891 = vmatpush.bf16.msra.mxu3 %v6409_v37  ;;  %v6467_v37 = vld [vmem:[%s8263_s1 + $0x498] sm:$0xff] }
  0x5e   :  { %3853 = vmatpush.bf16.msra.mxu0 %v6384_v38  ;;  %v6475_v38 = vld [vmem:[%s8263_s1 + $0x4d8] sm:$0xff] }
  0x5f   :  { %3866 = vmatpush.bf16.msra.mxu1 %v6392_v39  ;;  %v6450_v39 = vld [vmem:[%s8263_s1 + $0x410] sm:$0xff] }
  0x60   :  { %3879 = vmatpush.bf16.msra.mxu2 %v6400_v40  ;;  %v6458_v40 = vld [vmem:[%s8263_s1 + $0x450] sm:$0xff] }
  0x61   :  { %3892 = vmatpush.bf16.msra.mxu3 %v6408_v41  ;;  %3854 = vmatmul.bf16.vlgmr.msra.gmra.mxu0 %v940_v46  ;;  %v6466_v41 = vld [vmem:[%s8263_s1 + $0x490] sm:$0xff]  ;;  %v6473_v46 = vld [vmem:[%s8263_s1 + $0x4c8] sm:$0xff] }
  0x62   :  { %3898 = vmatpush.bf16.msrb.mxu0 %v6423_v42  ;;  %3867 = vmatmul.bf16.vlgmr.msra.gmra.mxu1 %v941_v48  ;;  %v6474_v42 = vld [vmem:[%s8263_s1 + $0x4d0] sm:$0xff]  ;;  %v6456_v48 = vld [vmem:[%s8263_s1 + $0x440] sm:$0xff] }
  0x63   :  { %3911 = vmatpush.bf16.msrb.mxu1 %v6431_v43  ;;  %3880 = vmatmul.bf16.vlgmr.msra.gmra.mxu2 %v942_v47  ;;  %v6449_v43 = vld [vmem:[%s8263_s1 + $0x408] sm:$0xff]  ;;  %v6448_v47 = vld [vmem:[%s8263_s1 + $0x400] sm:$0xff] }
  0x64   :  { %3924 = vmatpush.bf16.msrb.mxu2 %v6439_v44  ;;  %3893 = vmatmul.bf16.vlgmr.msra.gmra.mxu3 %v943_v49  ;;  %v6457_v44 = vld [vmem:[%s8263_s1 + $0x448] sm:$0xff]  ;;  %v6464_v49 = vld [vmem:[%s8263_s1 + $0x480] sm:$0xff] }
  0x65   :  { %3937 = vmatpush.bf16.msrb.mxu3 %v6447_v45  ;;  %v6465_v45 = vld [vmem:[%s8263_s1 + $0x488] sm:$0xff] }
  0x66   :  { %3899 = vmatpush.bf16.msrb.mxu0 %v6422_v50  ;;  %v6472_v50 = vld [vmem:[%s8263_s1 + $0x4c0] sm:$0xff] }
  0x67   :  { %3912 = vmatpush.bf16.msrb.mxu1 %v6430_v51  ;;  %v6487_v51 = vld [vmem:[%s8263_s1 + $0x538] sm:$0xff] }
  0x68   :  { %3925 = vmatpush.bf16.msrb.mxu2 %v6438_v52  ;;  %v6495_v52 = vld [vmem:[%s8263_s1 + $0x578] sm:$0xff] }
  0x69   :  { %3938 = vmatpush.bf16.msrb.mxu3 %v6446_v53  ;;  %v6503_v53 = vld [vmem:[%s8263_s1 + $0x5b8] sm:$0xff] }
  0x6a   :  { %3900 = vmatpush.bf16.msrb.mxu0 %v6421_v54  ;;  %v6511_v54 = vld [vmem:[%s8263_s1 + $0x5f8] sm:$0xff] }
  0x6b   :  { %3913 = vmatpush.bf16.msrb.mxu1 %v6429_v55  ;;  %v950_v55 = vld [vmem:[#allocation1] sm:$0xff] }
  0x6c   :  { %3926 = vmatpush.bf16.msrb.mxu2 %v6437_v56  ;;  %v952_v56 = vld [vmem:[#allocation1 + $0x12] sm:$0xff] }
  0x6d   :  { %3939 = vmatpush.bf16.msrb.mxu3 %v6445_v57  ;;  %v951_v57 = vld [vmem:[#allocation1 + $0x9] sm:$0xff] }
  0x6e   :  { %3901 = vmatpush.bf16.msrb.mxu0 %v6420_v58  ;;  %v953_v58 = vld [vmem:[#allocation1 + $0x1b] sm:$0xff] }
  0x6f   :  { %3914 = vmatpush.bf16.msrb.mxu1 %v6428_v59  ;;  %v6486_v59 = vld [vmem:[%s8263_s1 + $0x530] sm:$0xff] }
  0x70   :  { %3927 = vmatpush.bf16.msrb.mxu2 %v6436_v60  ;;  %v6494_v60 = vld [vmem:[%s8263_s1 + $0x570] sm:$0xff] }
  0x71   :  { %3940 = vmatpush.bf16.msrb.mxu3 %v6444_v61  ;;  %v6502_v61 = vld [vmem:[%s8263_s1 + $0x5b0] sm:$0xff] }
  0x72   :  { %3902 = vmatpush.bf16.msrb.mxu0 %v6419_v62  ;;  %v6510_v62 = vld [vmem:[%s8263_s1 + $0x5f0] sm:$0xff] }
  0x73   :  { %3915 = vmatpush.bf16.msrb.mxu1 %v6427_v63  ;;  %v6485_v63 = vld [vmem:[%s8263_s1 + $0x528] sm:$0xff] }
  0x74   :  { %3928 = vmatpush.bf16.msrb.mxu2 %v6435_v0  ;;  %v6493_v0 = vld [vmem:[%s8263_s1 + $0x568] sm:$0xff] }
  0x75   :  { %3941 = vmatpush.bf16.msrb.mxu3 %v6443_v1  ;;  %v6769_v1 = vld [vmem:[%s8264_s2] ss:$0 sm:$0xff] }
  0x76   :  { %3903 = vmatpush.bf16.msrb.mxu0 %v6418_v2  ;;  %v6501_v2 = vld [vmem:[%s8263_s1 + $0x5a8] sm:$0xff] }
  0x77   :  { %3916 = vmatpush.bf16.msrb.mxu1 %v6426_v3  ;;  %v6509_v3 = vld [vmem:[%s8263_s1 + $0x5e8] sm:$0xff] }
  0x78   :  { %3929 = vmatpush.bf16.msrb.mxu2 %v6434_v4 }
  0x79   :  { %3942 = vmatpush.bf16.msrb.mxu3 %v6442_v5  ;;  %v6484_v5 = vld [vmem:[%s8263_s1 + $0x520] sm:$0xff] }
  0x7a   :  { %3904 = vmatpush.bf16.msrb.mxu0 %v6417_v6  ;;  %v6492_v6 = vld [vmem:[%s8263_s1 + $0x560] sm:$0xff] }
  0x7b   :  { %3917 = vmatpush.bf16.msrb.mxu1 %v6425_v7 }
  0x7c   :  { %3930 = vmatpush.bf16.msrb.mxu2 %v6433_v8 }
  0x7d   :  { %3943 = vmatpush.bf16.msrb.mxu3 %v6441_v9  ;;  %v6500_v9 = vld [vmem:[%s8263_s1 + $0x5a0] sm:$0xff] }
  0x7e   :  { %3905 = vmatpush.bf16.msrb.mxu0 %v6416_v15  ;;  %v6507_v15 = vld [vmem:[%s8263_s1 + $0x5d8] sm:$0xff] }
  0x7f   :  { %3918 = vmatpush.bf16.msrb.mxu1 %v6424_v16 }
  0x80   :  { %3931 = vmatpush.bf16.msrb.mxu2 %v6432_v17 }
  0x81   :  { %3944 = vmatpush.bf16.msrb.mxu3 %v6440_v18  ;;  %3906 = vmatmul.bf16.vlgmr.msrb.gmra.mxu0 %v944_v10  ;;  %v6508_v10 = vld [vmem:[%s8263_s1 + $0x5e0] sm:$0xff] }
  0x82   :  { %3950 = vmatpush.bf16.msra.mxu0 %v6455_v19  ;;  %3919 = vmatmul.bf16.vlgmr.msrb.gmra.mxu1 %v945_v12  ;;  %v6483_v12 = vld [vmem:[%s8263_s1 + $0x518] sm:$0xff] }
  0x83   :  { %3963 = vmatpush.bf16.msra.mxu1 %v6463_v20  ;;  %3932 = vmatmul.bf16.vlgmr.msrb.gmra.mxu2 %v946_v11  ;;  %v6482_v20 = vld [vmem:[%s8263_s1 + $0x510] sm:$0xff] }
  0x84   :  { %3976 = vmatpush.bf16.msra.mxu2 %v6471_v21  ;;  %3945 = vmatmul.bf16.vlgmr.msrb.gmra.mxu3 %v947_v13  ;;  %v6491_v13 = vld [vmem:[%s8263_s1 + $0x558] sm:$0xff]  ;;  %v6490_v21 = vld [vmem:[%s8263_s1 + $0x550] sm:$0xff] }
  0x85   :  { %3989 = vmatpush.bf16.msra.mxu3 %v6479_v22 }
  0x86   :  { %3951 = vmatpush.bf16.msra.mxu0 %v6454_v23 }
  0x87   :  { %3964 = vmatpush.bf16.msra.mxu1 %v6462_v24  ;;  %v6498_v24 = vld [vmem:[%s8263_s1 + $0x590] sm:$0xff] }
  0x88   :  { %3977 = vmatpush.bf16.msra.mxu2 %v6470_v25  ;;  %v6506_v25 = vld [vmem:[%s8263_s1 + $0x5d0] sm:$0xff] }
  0x89   :  { %3990 = vmatpush.bf16.msra.mxu3 %v6478_v26  ;;  %v6481_v26 = vld [vmem:[%s8263_s1 + $0x508] sm:$0xff] }
  0x8a   :  { %3952 = vmatpush.bf16.msra.mxu0 %v6453_v27  ;;  %v6489_v27 = vld [vmem:[%s8263_s1 + $0x548] sm:$0xff] }
  0x8b   :  { %3965 = vmatpush.bf16.msra.mxu1 %v6461_v28  ;;  %v6497_v28 = vld [vmem:[%s8263_s1 + $0x588] sm:$0xff] }
  0x8c   :  { %3978 = vmatpush.bf16.msra.mxu2 %v6469_v29  ;;  %v6505_v29 = vld [vmem:[%s8263_s1 + $0x5c8] sm:$0xff] }
  0x8d   :  { %3991 = vmatpush.bf16.msra.mxu3 %v6477_v30  ;;  %v954_v30 = vld [vmem:[#allocation1 + $0x24] sm:$0xff] }
  0x8e   :  { %3953 = vmatpush.bf16.msra.mxu0 %v6452_v31  ;;  %v956_v31 = vld [vmem:[#allocation1 + $0x36] sm:$0xff] }
  0x8f   :  { %3966 = vmatpush.bf16.msra.mxu1 %v6460_v32 }
  0x90   :  { %3979 = vmatpush.bf16.msra.mxu2 %v6468_v33  ;;  %v955_v33 = vld [vmem:[#allocation1 + $0x2d] sm:$0xff] }
  0x91   :  { %3992 = vmatpush.bf16.msra.mxu3 %v6476_v34  ;;  %v957_v34 = vld [vmem:[#allocation1 + $0x3f] sm:$0xff] }
  0x92   :  { %3954 = vmatpush.bf16.msra.mxu0 %v6451_v35 }
  0x93   :  { %3967 = vmatpush.bf16.msra.mxu1 %v6459_v36  ;;  %v24_v36 = vld [vmem:[%s8262_s0 + $0x18] sm:$0xff] }
  0x94   :  { %3980 = vmatpush.bf16.msra.mxu2 %v6467_v37  ;;  %959 = vst [vmem:[#allocation1] ss:$9 sm:$0xff] %v24_v36  ;;  %v6480_v37 = vld [vmem:[%s8263_s1 + $0x500] sm:$0xff]  ;;  %v6573_v36 = vld [vmem:[%s8263_s1 + $0x7e8] sm:$0xff] }
  0x95   :  { %3993 = vmatpush.bf16.msra.mxu3 %v6475_v38  ;;  %v6488_v38 = vld [vmem:[%s8263_s1 + $0x540] sm:$0xff] }
  0x96   :  { %3955 = vmatpush.bf16.msra.mxu0 %v6450_v39  ;;  %v6496_v39 = vld [vmem:[%s8263_s1 + $0x580] sm:$0xff] }
  0x97   :  { %3968 = vmatpush.bf16.msra.mxu1 %v6458_v40  ;;  %v6504_v40 = vld [vmem:[%s8263_s1 + $0x5c0] sm:$0xff] }
  0x98   :  { %3981 = vmatpush.bf16.msra.mxu2 %v6466_v41  ;;  %v6519_v41 = vld [vmem:[%s8263_s1 + $0x638] sm:$0xff] }
  0x99   :  { %3994 = vmatpush.bf16.msra.mxu3 %v6474_v42  ;;  %v6527_v42 = vld [vmem:[%s8263_s1 + $0x678] sm:$0xff] }
  0x9a   :  { %3956 = vmatpush.bf16.msra.mxu0 %v6449_v43  ;;  %v6535_v43 = vld [vmem:[%s8263_s1 + $0x6b8] sm:$0xff] }
  0x9b   :  { %3969 = vmatpush.bf16.msra.mxu1 %v6457_v44  ;;  %v6543_v44 = vld [vmem:[%s8263_s1 + $0x6f8] sm:$0xff] }
  0x9c   :  { %3982 = vmatpush.bf16.msra.mxu2 %v6465_v45  ;;  %v6518_v45 = vld [vmem:[%s8263_s1 + $0x630] sm:$0xff] }
  0x9d   :  { %3995 = vmatpush.bf16.msra.mxu3 %v6473_v46  ;;  %v6526_v46 = vld [vmem:[%s8263_s1 + $0x670] sm:$0xff] }
  0x9e   :  { %3957 = vmatpush.bf16.msra.mxu0 %v6448_v47  ;;  %v3751_v4 = vpop.f32.mrf.mxu0  ;;  %v6534_v47 = vld [vmem:[%s8263_s1 + $0x6b0] sm:$0xff] }
  0x9f   :  { %3970 = vmatpush.bf16.msra.mxu1 %v6456_v48  ;;  %v3752_v7 = vadd.f32 %v6769_v1, %v3751_v4  ;;  %v3764_v8 = vpop.f32.mrf.mxu1  ;;  %v6542_v48 = vld [vmem:[%s8263_s1 + $0x6f0] sm:$0xff] }
  0xa0   :  { %3983 = vmatpush.bf16.msra.mxu2 %v6464_v49  ;;  %v6517_v49 = vld [vmem:[%s8263_s1 + $0x628] sm:$0xff] }
  0xa1   :  { %3996 = vmatpush.bf16.msra.mxu3 %v6472_v50  ;;  %3958 = vmatmul.bf16.vlgmr.msra.gmra.mxu0 %v950_v55  ;;  %v3765_v11 = vadd.f32 %v3764_v8, %v3752_v7  ;;  %v6525_v50 = vld [vmem:[%s8263_s1 + $0x668] sm:$0xff]  ;;  %v6524_v55 = vld [vmem:[%s8263_s1 + $0x660] sm:$0xff] }
  0xa2   :  { %4002 = vmatpush.bf16.msrb.mxu0 %v6487_v51  ;;  %3971 = vmatmul.bf16.vlgmr.msra.gmra.mxu1 %v951_v57  ;;  %v6533_v51 = vld [vmem:[%s8263_s1 + $0x6a8] sm:$0xff] }
  0xa3   :  { %4015 = vmatpush.bf16.msrb.mxu1 %v6495_v52  ;;  %3984 = vmatmul.bf16.vlgmr.msra.gmra.mxu2 %v952_v56  ;;  %v6541_v52 = vld [vmem:[%s8263_s1 + $0x6e8] sm:$0xff] }
  0xa4   :  { %4028 = vmatpush.bf16.msrb.mxu2 %v6503_v53  ;;  %3997 = vmatmul.bf16.vlgmr.msra.gmra.mxu3 %v953_v58  ;;  %v6532_v58 = vld [vmem:[%s8263_s1 + $0x6a0] sm:$0xff] }
  0xa5   :  { %4041 = vmatpush.bf16.msrb.mxu3 %v6511_v54  ;;  %v6516_v54 = vld [vmem:[%s8263_s1 + $0x620] sm:$0xff] }
  0xa6   :  { %4003 = vmatpush.bf16.msrb.mxu0 %v6486_v59  ;;  %v3777_v16 = vpop.f32.mrf.mxu2  ;;  %v3753_v19 = vpop.f32.mrf.mxu0  ;;  %v6540_v59 = vld [vmem:[%s8263_s1 + $0x6e0] sm:$0xff] }
  0xa7   :  { %4016 = vmatpush.bf16.msrb.mxu1 %v6494_v60  ;;  %v3778_v17 = vadd.f32 %v3777_v16, %v3765_v11  ;;  %v3790_v18 = vpop.f32.mrf.mxu3  ;;  %v3766_v23 = vpop.f32.mrf.mxu1  ;;  %v6513_v11 = vld [vmem:[%s8263_s1 + $0x608] sm:$0xff]  ;;  %v6528_v19 = vld [vmem:[%s8263_s1 + $0x680] sm:$0xff] }
  0xa8   :  { %4029 = vmatpush.bf16.msrb.mxu2 %v6502_v61  ;;  %v6515_v61 = vld [vmem:[%s8263_s1 + $0x618] sm:$0xff] }
  0xa9   :  { %4042 = vmatpush.bf16.msrb.mxu3 %v6510_v62  ;;  %v7386_v22 = vadd.f32 %v3790_v18, %v3778_v17  ;;  %v6523_v62 = vld [vmem:[%s8263_s1 + $0x658] sm:$0xff]  ;;  %v6512_v17 = vld [vmem:[%s8263_s1 + $0x600] sm:$0xff] }
  0xaa   :  { %4004 = vmatpush.bf16.msrb.mxu0 %v6485_v63  ;;  %v6531_v63 = vld [vmem:[%s8263_s1 + $0x698] sm:$0xff]  ;;  %v6520_v18 = vld [vmem:[%s8263_s1 + $0x640] sm:$0xff] }
  0xab   :  { %4017 = vmatpush.bf16.msrb.mxu1 %v6493_v0  ;;  %v6539_v0 = vld [vmem:[%s8263_s1 + $0x6d8] sm:$0xff] }
  0xac   :  { %4030 = vmatpush.bf16.msrb.mxu2 %v6501_v2  ;;  %v6567_v23 = vld [vmem:[%s8263_s1 + $0x7b8] sm:$0xff] }
  0xad   :  { %4043 = vmatpush.bf16.msrb.mxu3 %v6509_v3 }
  0xae   :  { %4005 = vmatpush.bf16.msrb.mxu0 %v6484_v5  ;;  %v3779_v32 = vpop.f32.mrf.mxu2  ;;  %v6514_v5 = vld [vmem:[%s8263_s1 + $0x610] sm:$0xff] }
  0xaf   :  { %4018 = vmatpush.bf16.msrb.mxu1 %v6492_v6  ;;  %v3792_v35 = vpop.f32.mrf.mxu3  ;;  %v6522_v6 = vld [vmem:[%s8263_s1 + $0x650] sm:$0xff] }
  0xb0   :  { %4031 = vmatpush.bf16.msrb.mxu2 %v6500_v9  ;;  %v6530_v9 = vld [vmem:[%s8263_s1 + $0x690] sm:$0xff]  ;;  %v6565_v35 = vld [vmem:[%s8263_s1 + $0x7a8] sm:$0xff] }
  0xb1   :  { %4044 = vmatpush.bf16.msrb.mxu3 %v6508_v10  ;;  %v6538_v10 = vld [vmem:[%s8263_s1 + $0x6d0] sm:$0xff] }
  0xb2   :  { %4006 = vmatpush.bf16.msrb.mxu0 %v6483_v12  ;;  %v6521_v12 = vld [vmem:[%s8263_s1 + $0x648] sm:$0xff]  ;;  %v6574_v32 = vld [vmem:[%s8263_s1 + $0x7f0] sm:$0xff] }
  0xb3   :  { %4019 = vmatpush.bf16.msrb.mxu1 %v6491_v13  ;;  %v6529_v13 = vld [vmem:[%s8263_s1 + $0x688] sm:$0xff] }
  0xb4   :  { %4032 = vmatpush.bf16.msrb.mxu2 %v6499_v14  ;;  %v6537_v14 = vld [vmem:[%s8263_s1 + $0x6c8] sm:$0xff] }
  0xb5   :  { %4045 = vmatpush.bf16.msrb.mxu3 %v6507_v15 }
  0xb6   :  { %4007 = vmatpush.bf16.msrb.mxu0 %v6482_v20  ;;  %v6536_v20 = vld [vmem:[%s8263_s1 + $0x6c0] sm:$0xff] }
  0xb7   :  { %4020 = vmatpush.bf16.msrb.mxu1 %v6490_v21  ;;  %v6551_v21 = vld [vmem:[%s8263_s1 + $0x738] sm:$0xff] }
  0xb8   :  { %4033 = vmatpush.bf16.msrb.mxu2 %v6498_v24  ;;  %v6575_v24 = vld [vmem:[%s8263_s1 + $0x7f8] sm:$0xff] }
  0xb9   :  { %4046 = vmatpush.bf16.msrb.mxu3 %v6506_v25  ;;  %v960_v25 = vld [vmem:[#allocation1] sm:$0xff] }
  0xba   :  { %4008 = vmatpush.bf16.msrb.mxu0 %v6481_v26  ;;  %v962_v26 = vld [vmem:[#allocation1 + $0x12] sm:$0xff] }
  0xbb   :  { %4021 = vmatpush.bf16.msrb.mxu1 %v6489_v27  ;;  %v961_v27 = vld [vmem:[#allocation1 + $0x9] sm:$0xff] }
  0xbc   :  { %4034 = vmatpush.bf16.msrb.mxu2 %v6497_v28  ;;  %v963_v28 = vld [vmem:[#allocation1 + $0x1b] sm:$0xff] }
  0xbd   :  { %4047 = vmatpush.bf16.msrb.mxu3 %v6505_v29  ;;  %v6550_v29 = vld [vmem:[%s8263_s1 + $0x730] sm:$0xff] }
  0xbe   :  { %4009 = vmatpush.bf16.msrb.mxu0 %v6480_v37  ;;  %v3803_v53 = vpop.f32.mrf.mxu0 }
  0xbf   :  { %4022 = vmatpush.bf16.msrb.mxu1 %v6488_v38  ;;  %v3804_v56 = vadd.f32 %v3803_v53, %v7386_v22  ;;  %v3816_v57 = vpop.f32.mrf.mxu1  ;;  %v6559_v22 = vld [vmem:[%s8263_s1 + $0x778] sm:$0xff] }
  0xc0   :  { %4035 = vmatpush.bf16.msrb.mxu2 %v6496_v39  ;;  %v6548_v39 = vld [vmem:[%s8263_s1 + $0x720] sm:$0xff] }
  0xc1   :  { %4048 = vmatpush.bf16.msrb.mxu3 %v6504_v40  ;;  %4010 = vmatmul.bf16.vlgmr.msrb.gmra.mxu0 %v954_v30  ;;  %v3817_v60 = vadd.f32 %v3816_v57, %v3804_v56  ;;  %v6558_v30 = vld [vmem:[%s8263_s1 + $0x770] sm:$0xff]  ;;  %v6556_v40 = vld [vmem:[%s8263_s1 + $0x760] sm:$0xff] }
  0xc2   :  { %4054 = vmatpush.bf16.msra.mxu0 %v6519_v41  ;;  %4023 = vmatmul.bf16.vlgmr.msrb.gmra.mxu1 %v955_v33  ;;  %v6549_v33 = vld [vmem:[%s8263_s1 + $0x728] sm:$0xff]  ;;  %v6562_v57 = vld [vmem:[%s8263_s1 + $0x790] sm:$0xff] }
  0xc3   :  { %4067 = vmatpush.bf16.msra.mxu1 %v6527_v42  ;;  %4036 = vmatmul.bf16.vlgmr.msrb.gmra.mxu2 %v956_v31  ;;  %v6566_v31 = vld [vmem:[%s8263_s1 + $0x7b0] sm:$0xff]  ;;  %v6564_v42 = vld [vmem:[%s8263_s1 + $0x7a0] sm:$0xff] }
  0xc4   :  { %4080 = vmatpush.bf16.msra.mxu2 %v6535_v43  ;;  %4049 = vmatmul.bf16.vlgmr.msrb.gmra.mxu3 %v957_v34  ;;  %v6557_v34 = vld [vmem:[%s8263_s1 + $0x768] sm:$0xff]  ;;  %v6572_v43 = vld [vmem:[%s8263_s1 + $0x7e0] sm:$0xff] }
  0xc5   :  { %4093 = vmatpush.bf16.msra.mxu3 %v6543_v44 }
  0xc6   :  { %4055 = vmatpush.bf16.msra.mxu0 %v6518_v45  ;;  %v3829_v1 = vpop.f32.mrf.mxu2  ;;  %v3805_v4 = vpop.f32.mrf.mxu0  ;;  %v6547_v45 = vld [vmem:[%s8263_s1 + $0x718] sm:$0xff] }
  0xc7   :  { %4068 = vmatpush.bf16.msra.mxu1 %v6526_v46  ;;  %v3830_v2 = vadd.f32 %v3829_v1, %v3817_v60  ;;  %v3842_v3 = vpop.f32.mrf.mxu3  ;;  %v3818_v8 = vpop.f32.mrf.mxu1  ;;  %v6555_v46 = vld [vmem:[%s8263_s1 + $0x758] sm:$0xff]  ;;  %v6553_v60 = vld [vmem:[%s8263_s1 + $0x748] sm:$0xff] }
  0xc8   :  { %4081 = vmatpush.bf16.msra.mxu2 %v6534_v47  ;;  %v6563_v47 = vld [vmem:[%s8263_s1 + $0x798] sm:$0xff]  ;;  %v6560_v8 = vld [vmem:[%s8263_s1 + $0x780] sm:$0xff] }
  0xc9   :  { %4094 = vmatpush.bf16.msra.mxu3 %v6542_v48  ;;  %v3843_v7 = vadd.f32 %v3842_v3, %v3830_v2  ;;  %v6571_v48 = vld [vmem:[%s8263_s1 + $0x7d8] sm:$0xff]  ;;  %v965_v2 = vld [vmem:[#allocation1 + $0x2d] sm:$0xff] }
  0xca   :  { %4056 = vmatpush.bf16.msra.mxu0 %v6517_v49  ;;  %v967_v3 = vld [vmem:[#allocation1 + $0x3f] sm:$0xff] }
  0xcb   :  { %4069 = vmatpush.bf16.msra.mxu1 %v6525_v50 }
  0xcc   :  { %4082 = vmatpush.bf16.msra.mxu2 %v6533_v51 }
  0xcd   :  { %4095 = vmatpush.bf16.msra.mxu3 %v6541_v52 }
  0xce   :  { %4057 = vmatpush.bf16.msra.mxu0 %v6516_v54  ;;  %v3831_v15 = vpop.f32.mrf.mxu2  ;;  %v6546_v54 = vld [vmem:[%s8263_s1 + $0x710] sm:$0xff] }
  0xcf   :  { %4070 = vmatpush.bf16.msra.mxu1 %v6524_v55  ;;  %v3844_v16 = vpop.f32.mrf.mxu3  ;;  %v6554_v55 = vld [vmem:[%s8263_s1 + $0x750] sm:$0xff] }
  0xd0   :  { %4083 = vmatpush.bf16.msra.mxu2 %v6532_v58  ;;  %v6570_v58 = vld [vmem:[%s8263_s1 + $0x7d0] sm:$0xff] }
  0xd1   :  { %4096 = vmatpush.bf16.msra.mxu3 %v6540_v59  ;;  %v6545_v59 = vld [vmem:[%s8263_s1 + $0x708] sm:$0xff]  ;;  %v6590_v15 = vld [vmem:[%s8263_s1 + $0x870] sm:$0xff] }
  0xd2   :  { %4058 = vmatpush.bf16.msra.mxu0 %v6515_v61  ;;  %v6561_v61 = vld [vmem:[%s8263_s1 + $0x788] sm:$0xff]  ;;  %v6598_v16 = vld [vmem:[%s8263_s1 + $0x8b0] sm:$0xff] }
  0xd3   :  { %4071 = vmatpush.bf16.msra.mxu1 %v6523_v62  ;;  %v6569_v62 = vld [vmem:[%s8263_s1 + $0x7c8] sm:$0xff] }
  0xd4   :  { %4084 = vmatpush.bf16.msra.mxu2 %v6531_v63  ;;  %v964_v63 = vld [vmem:[#allocation1 + $0x24] sm:$0xff] }
  0xd5   :  { %4097 = vmatpush.bf16.msra.mxu3 %v6539_v0  ;;  %v966_v0 = vld [vmem:[#allocation1 + $0x36] sm:$0xff] }
  0xd6   :  { %4059 = vmatpush.bf16.msra.mxu0 %v6514_v5  ;;  %v25_v5 = vld [vmem:[%s8262_s0 + $0x20] sm:$0xff] }
  0xd7   :  { %4072 = vmatpush.bf16.msra.mxu1 %v6522_v6  ;;  %969 = vst [vmem:[#allocation1] ss:$9 sm:$0xff] %v25_v5  ;;  %v6544_v6 = vld [vmem:[%s8263_s1 + $0x700] sm:$0xff]  ;;  %v6637_v5 = vld [vmem:[%s8263_s1 + $0x9e8] sm:$0xff] }
  0xd8   :  { %4085 = vmatpush.bf16.msra.mxu2 %v6530_v9  ;;  %v6568_v9 = vld [vmem:[%s8263_s1 + $0x7c0] sm:$0xff] }
  0xd9   :  { %4098 = vmatpush.bf16.msra.mxu3 %v6538_v10  ;;  %v6583_v10 = vld [vmem:[%s8263_s1 + $0x838] sm:$0xff] }
  0xda   :  { %4060 = vmatpush.bf16.msra.mxu0 %v6513_v11  ;;  %v6591_v11 = vld [vmem:[%s8263_s1 + $0x878] sm:$0xff] }
  0xdb   :  { %4073 = vmatpush.bf16.msra.mxu1 %v6521_v12  ;;  %v6599_v12 = vld [vmem:[%s8263_s1 + $0x8b8] sm:$0xff] }
  0xdc   :  { %4086 = vmatpush.bf16.msra.mxu2 %v6529_v13  ;;  %v6607_v13 = vld [vmem:[%s8263_s1 + $0x8f8] sm:$0xff] }
  0xdd   :  { %4099 = vmatpush.bf16.msra.mxu3 %v6537_v14  ;;  %v6582_v14 = vld [vmem:[%s8263_s1 + $0x830] sm:$0xff] }
  0xde   :  { %4061 = vmatpush.bf16.msra.mxu0 %v6512_v17  ;;  %v3855_v37 = vpop.f32.mrf.mxu0  ;;  %v6606_v17 = vld [vmem:[%s8263_s1 + $0x8f0] sm:$0xff] }
  0xdf   :  { %4074 = vmatpush.bf16.msra.mxu1 %v6520_v18  ;;  %v3856_v38 = vadd.f32 %v3855_v37, %v3843_v7  ;;  %v3868_v41 = vpop.f32.mrf.mxu1  ;;  %v6552_v7 = vld [vmem:[%s8263_s1 + $0x740] sm:$0xff]  ;;  %v6581_v18 = vld [vmem:[%s8263_s1 + $0x828] sm:$0xff] }
  0xe0   :  { %4087 = vmatpush.bf16.msra.mxu2 %v6528_v19  ;;  %v6589_v19 = vld [vmem:[%s8263_s1 + $0x868] sm:$0xff] }
  0xe1   :  { %4100 = vmatpush.bf16.msra.mxu3 %v6536_v20  ;;  %4062 = vmatmul.bf16.vlgmr.msra.gmra.mxu0 %v960_v25  ;;  %v3869_v44 = vadd.f32 %v3868_v41, %v3856_v38  ;;  %v6597_v20 = vld [vmem:[%s8263_s1 + $0x8a8] sm:$0xff]  ;;  %v6588_v25 = vld [vmem:[%s8263_s1 + $0x860] sm:$0xff] }
  0xe2   :  { %4106 = vmatpush.bf16.msrb.mxu0 %v6551_v21  ;;  %4075 = vmatmul.bf16.vlgmr.msra.gmra.mxu1 %v961_v27  ;;  %v6605_v21 = vld [vmem:[%s8263_s1 + $0x8e8] sm:$0xff]  ;;  %v6596_v27 = vld [vmem:[%s8263_s1 + $0x8a0] sm:$0xff] }
  0xe3   :  { %4119 = vmatpush.bf16.msrb.mxu1 %v6559_v22  ;;  %4088 = vmatmul.bf16.vlgmr.msra.gmra.mxu2 %v962_v26 }
  0xe4   :  { %4132 = vmatpush.bf16.msrb.mxu2 %v6567_v23  ;;  %4101 = vmatmul.bf16.vlgmr.msra.gmra.mxu3 %v963_v28  ;;  %v6604_v28 = vld [vmem:[%s8263_s1 + $0x8e0] sm:$0xff] }
  0xe5   :  { %4145 = vmatpush.bf16.msrb.mxu3 %v6575_v24  ;;  %v6580_v24 = vld [vmem:[%s8263_s1 + $0x820] sm:$0xff] }
  0xe6   :  { %4107 = vmatpush.bf16.msrb.mxu0 %v6550_v29  ;;  %v3881_v49 = vpop.f32.mrf.mxu2  ;;  %v3857_v52 = vpop.f32.mrf.mxu0 }
  0xe7   :  { %4120 = vmatpush.bf16.msrb.mxu1 %v6558_v30  ;;  %v3882_v50 = vadd.f32 %v3881_v49, %v3869_v44  ;;  %v3894_v51 = vpop.f32.mrf.mxu3  ;;  %v3870_v56 = vpop.f32.mrf.mxu1  ;;  %v6579_v30 = vld [vmem:[%s8263_s1 + $0x818] sm:$0xff]  ;;  %v6577_v44 = vld [vmem:[%s8263_s1 + $0x808] sm:$0xff]  ;;  %v6592_v52 = vld [vmem:[%s8263_s1 + $0x880] sm:$0xff] }
  0xe8   :  { %4133 = vmatpush.bf16.msrb.mxu2 %v6566_v31  ;;  %v6587_v31 = vld [vmem:[%s8263_s1 + $0x858] sm:$0xff] }
  0xe9   :  { %4146 = vmatpush.bf16.msrb.mxu3 %v6574_v32  ;;  %v7578_v53 = vadd.f32 %v3894_v51, %v3882_v50  ;;  %v6595_v32 = vld [vmem:[%s8263_s1 + $0x898] sm:$0xff]  ;;  %v6576_v50 = vld [vmem:[%s8263_s1 + $0x800] sm:$0xff] }
  0xea   :  { %4108 = vmatpush.bf16.msrb.mxu0 %v6549_v33  ;;  %v6603_v33 = vld [vmem:[%s8263_s1 + $0x8d8] sm:$0xff]  ;;  %v6584_v51 = vld [vmem:[%s8263_s1 + $0x840] sm:$0xff] }
  0xeb   :  { %4121 = vmatpush.bf16.msrb.mxu1 %v6557_v34  ;;  %v6631_v56 = vld [vmem:[%s8263_s1 + $0x9b8] sm:$0xff] }
  0xec   :  { %4134 = vmatpush.bf16.msrb.mxu2 %v6565_v35 }
  0xed   :  { %4147 = vmatpush.bf16.msrb.mxu3 %v6573_v36 }
  0xee   :  { %4109 = vmatpush.bf16.msrb.mxu0 %v6548_v39  ;;  %v3883_v1 = vpop.f32.mrf.mxu2  ;;  %v6578_v39 = vld [vmem:[%s8263_s1 + $0x810] sm:$0xff] }
  0xef   :  { %4122 = vmatpush.bf16.msrb.mxu1 %v6556_v40  ;;  %v3896_v4 = vpop.f32.mrf.mxu3  ;;  %v6586_v40 = vld [vmem:[%s8263_s1 + $0x850] sm:$0xff] }
  0xf0   :  { %4135 = vmatpush.bf16.msrb.mxu2 %v6564_v42  ;;  %v6594_v42 = vld [vmem:[%s8263_s1 + $0x890] sm:$0xff]  ;;  %v6629_v4 = vld [vmem:[%s8263_s1 + $0x9a8] sm:$0xff] }
  0xf1   :  { %4148 = vmatpush.bf16.msrb.mxu3 %v6572_v43  ;;  %v6602_v43 = vld [vmem:[%s8263_s1 + $0x8d0] sm:$0xff] }
  0xf2   :  { %4110 = vmatpush.bf16.msrb.mxu0 %v6547_v45  ;;  %v6585_v45 = vld [vmem:[%s8263_s1 + $0x848] sm:$0xff]  ;;  %v6638_v1 = vld [vmem:[%s8263_s1 + $0x9f0] sm:$0xff] }
  0xf3   :  { %4123 = vmatpush.bf16.msrb.mxu1 %v6555_v46  ;;  %v6593_v46 = vld [vmem:[%s8263_s1 + $0x888] sm:$0xff] }
  0xf4   :  { %4136 = vmatpush.bf16.msrb.mxu2 %v6563_v47  ;;  %v6601_v47 = vld [vmem:[%s8263_s1 + $0x8c8] sm:$0xff] }
  0xf5   :  { %4149 = vmatpush.bf16.msrb.mxu3 %v6571_v48 }
  0xf6   :  { %4111 = vmatpush.bf16.msrb.mxu0 %v6546_v54  ;;  %v6615_v54 = vld [vmem:[%s8263_s1 + $0x938] sm:$0xff] }
  0xf7   :  { %4124 = vmatpush.bf16.msrb.mxu1 %v6554_v55  ;;  %v6623_v55 = vld [vmem:[%s8263_s1 + $0x978] sm:$0xff] }
  0xf8   :  { %4137 = vmatpush.bf16.msrb.mxu2 %v6562_v57  ;;  %v6639_v57 = vld [vmem:[%s8263_s1 + $0x9f8] sm:$0xff] }
  0xf9   :  { %4150 = vmatpush.bf16.msrb.mxu3 %v6570_v58  ;;  %v970_v58 = vld [vmem:[#allocation1] sm:$0xff] }
  0xfa   :  { %4112 = vmatpush.bf16.msrb.mxu0 %v6545_v59  ;;  %v972_v59 = vld [vmem:[#allocation1 + $0x12] sm:$0xff] }
  0xfb   :  { %4125 = vmatpush.bf16.msrb.mxu1 %v6553_v60  ;;  %v971_v60 = vld [vmem:[#allocation1 + $0x9] sm:$0xff] }
  0xfc   :  { %4138 = vmatpush.bf16.msrb.mxu2 %v6561_v61  ;;  %v973_v61 = vld [vmem:[#allocation1 + $0x1b] sm:$0xff] }
  0xfd   :  { %4151 = vmatpush.bf16.msrb.mxu3 %v6569_v62  ;;  %v6614_v62 = vld [vmem:[%s8263_s1 + $0x930] sm:$0xff] }
  0xfe   :  { %4113 = vmatpush.bf16.msrb.mxu0 %v6544_v6  ;;  %v3907_v22 = vpop.f32.mrf.mxu0 }
  0xff   :  { %4126 = vmatpush.bf16.msrb.mxu1 %v6552_v7  ;;  %v3908_v23 = vadd.f32 %v3907_v22, %v7578_v53  ;;  %v3920_v26 = vpop.f32.mrf.mxu1  ;;  %v6600_v53 = vld [vmem:[%s8263_s1 + $0x8c0] sm:$0xff] }
 0x100   :  { %4139 = vmatpush.bf16.msrb.mxu2 %v6560_v8  ;;  %v6612_v8 = vld [vmem:[%s8263_s1 + $0x920] sm:$0xff] }
 0x101   :  { %4152 = vmatpush.bf16.msrb.mxu3 %v6568_v9  ;;  %4114 = vmatmul.bf16.vlgmr.msrb.gmra.mxu0 %v964_v63  ;;  %v3921_v29 = vadd.f32 %v3920_v26, %v3908_v23  ;;  %v6622_v63 = vld [vmem:[%s8263_s1 + $0x970] sm:$0xff]  ;;  %v6620_v9 = vld [vmem:[%s8263_s1 + $0x960] sm:$0xff] }
 0x102   :  { %4158 = vmatpush.bf16.msra.mxu0 %v6583_v10  ;;  %4127 = vmatmul.bf16.vlgmr.msrb.gmra.mxu1 %v965_v2  ;;  %v6613_v2 = vld [vmem:[%s8263_s1 + $0x928] sm:$0xff]  ;;  %v6610_v23 = vld [vmem:[%s8263_s1 + $0x910] sm:$0xff] }
 0x103   :  { %4171 = vmatpush.bf16.msra.mxu1 %v6591_v11  ;;  %4140 = vmatmul.bf16.vlgmr.msrb.gmra.mxu2 %v966_v0  ;;  %v6630_v0 = vld [vmem:[%s8263_s1 + $0x9b0] sm:$0xff]  ;;  %v6628_v11 = vld [vmem:[%s8263_s1 + $0x9a0] sm:$0xff] }
 0x104   :  { %4184 = vmatpush.bf16.msra.mxu2 %v6599_v12  ;;  %4153 = vmatmul.bf16.vlgmr.msrb.gmra.mxu3 %v967_v3  ;;  %v6621_v3 = vld [vmem:[%s8263_s1 + $0x968] sm:$0xff]  ;;  %v6636_v12 = vld [vmem:[%s8263_s1 + $0x9e0] sm:$0xff]  ;;  %v6626_v26 = vld [vmem:[%s8263_s1 + $0x990] sm:$0xff] }
 0x105   :  { %4197 = vmatpush.bf16.msra.mxu3 %v6607_v13 }
 0x106   :  { %4159 = vmatpush.bf16.msra.mxu0 %v6582_v14  ;;  %v3933_v34 = vpop.f32.mrf.mxu2  ;;  %v3909_v37 = vpop.f32.mrf.mxu0  ;;  %v6611_v14 = vld [vmem:[%s8263_s1 + $0x918] sm:$0xff] }
 0x107   :  { %4172 = vmatpush.bf16.msra.mxu1 %v6590_v15  ;;  %v3934_v35 = vadd.f32 %v3933_v34, %v3921_v29  ;;  %v3946_v36 = vpop.f32.mrf.mxu3  ;;  %v3922_v41 = vpop.f32.mrf.mxu1  ;;  %v6619_v15 = vld [vmem:[%s8263_s1 + $0x958] sm:$0xff]  ;;  %v6617_v29 = vld [vmem:[%s8263_s1 + $0x948] sm:$0xff] }
 0x108   :  { %4185 = vmatpush.bf16.msra.mxu2 %v6598_v16  ;;  %v6627_v16 = vld [vmem:[%s8263_s1 + $0x998] sm:$0xff]  ;;  %v6624_v41 = vld [vmem:[%s8263_s1 + $0x980] sm:$0xff] }
 0x109   :  { %4198 = vmatpush.bf16.msra.mxu3 %v6606_v17  ;;  %v3947_v38 = vadd.f32 %v3946_v36, %v3934_v35  ;;  %v6635_v17 = vld [vmem:[%s8263_s1 + $0x9d8] sm:$0xff]  ;;  %v975_v35 = vld [vmem:[#allocation1 + $0x2d] sm:$0xff] }
 0x10a   :  { %4160 = vmatpush.bf16.msra.mxu0 %v6581_v18  ;;  %v977_v36 = vld [vmem:[#allocation1 + $0x3f] sm:$0xff] }
 0x10b   :  { %4173 = vmatpush.bf16.msra.mxu1 %v6589_v19 }
 0x10c   :  { %4186 = vmatpush.bf16.msra.mxu2 %v6597_v20 }
 0x10d   :  { %4199 = vmatpush.bf16.msra.mxu3 %v6605_v21 }
 0x10e   :  { %4161 = vmatpush.bf16.msra.mxu0 %v6580_v24  ;;  %v3935_v48 = vpop.f32.mrf.mxu2  ;;  %v6618_v24 = vld [vmem:[%s8263_s1 + $0x950] sm:$0xff] }
 0x10f   :  { %4174 = vmatpush.bf16.msra.mxu1 %v6588_v25  ;;  %v3948_v49 = vpop.f32.mrf.mxu3  ;;  %v6654_v48 = vld [vmem:[%s8263_s1 + $0xa70] sm:$0xff] }
 0x110   :  { %4187 = vmatpush.bf16.msra.mxu2 %v6596_v27  ;;  %v6634_v27 = vld [vmem:[%s8263_s1 + $0x9d0] sm:$0xff] }
 0x111   :  { %4200 = vmatpush.bf16.msra.mxu3 %v6604_v28  ;;  %v6609_v28 = vld [vmem:[%s8263_s1 + $0x908] sm:$0xff]  ;;  %v6662_v49 = vld [vmem:[%s8263_s1 + $0xab0] sm:$0xff] }
 0x112   :  { %4162 = vmatpush.bf16.msra.mxu0 %v6579_v30  ;;  %v6625_v30 = vld [vmem:[%s8263_s1 + $0x988] sm:$0xff] }
 0x113   :  { %4175 = vmatpush.bf16.msra.mxu1 %v6587_v31  ;;  %v6633_v31 = vld [vmem:[%s8263_s1 + $0x9c8] sm:$0xff] }
 0x114   :  { %4188 = vmatpush.bf16.msra.mxu2 %v6595_v32  ;;  %v974_v32 = vld [vmem:[#allocation1 + $0x24] sm:$0xff] }
 0x115   :  { %4201 = vmatpush.bf16.msra.mxu3 %v6603_v33  ;;  %v976_v33 = vld [vmem:[#allocation1 + $0x36] sm:$0xff] }
 0x116   :  { %4163 = vmatpush.bf16.msra.mxu0 %v6578_v39  ;;  %v6608_v39 = vld [vmem:[%s8263_s1 + $0x900] sm:$0xff] }
 0x117   :  { %4176 = vmatpush.bf16.msra.mxu1 %v6586_v40  ;;  %v6616_v40 = vld [vmem:[%s8263_s1 + $0x940] sm:$0xff] }
 0x118   :  { %4189 = vmatpush.bf16.msra.mxu2 %v6594_v42  ;;  %v6632_v42 = vld [vmem:[%s8263_s1 + $0x9c0] sm:$0xff] }
 0x119   :  { %4202 = vmatpush.bf16.msra.mxu3 %v6602_v43  ;;  %v6647_v43 = vld [vmem:[%s8263_s1 + $0xa38] sm:$0xff] }
 0x11a   :  { %4164 = vmatpush.bf16.msra.mxu0 %v6577_v44  ;;  %v6655_v44 = vld [vmem:[%s8263_s1 + $0xa78] sm:$0xff] }
 0x11b   :  { %4177 = vmatpush.bf16.msra.mxu1 %v6585_v45  ;;  %v6663_v45 = vld [vmem:[%s8263_s1 + $0xab8] sm:$0xff] }
 0x11c   :  { %4190 = vmatpush.bf16.msra.mxu2 %v6593_v46  ;;  %v6671_v46 = vld [vmem:[%s8263_s1 + $0xaf8] sm:$0xff] }
 0x11d   :  { %4203 = vmatpush.bf16.msra.mxu3 %v6601_v47  ;;  %v6646_v47 = vld [vmem:[%s8263_s1 + $0xa30] sm:$0xff] }
 0x11e   :  { %4165 = vmatpush.bf16.msra.mxu0 %v6576_v50  ;;  %v3959_v6 = vpop.f32.mrf.mxu0  ;;  %v6670_v50 = vld [vmem:[%s8263_s1 + $0xaf0] sm:$0xff] }
 0x11f   :  { %4178 = vmatpush.bf16.msra.mxu1 %v6584_v51  ;;  %v3960_v7 = vadd.f32 %v3959_v6, %v3947_v38  ;;  %v3972_v10 = vpop.f32.mrf.mxu1  ;;  %v26_v38 = vld [vmem:[%s8262_s0 + $0x28] sm:$0xff] }
 0x120   :  { %4191 = vmatpush.bf16.msra.mxu2 %v6592_v52  ;;  %979 = vst [vmem:[#allocation1] ss:$9 sm:$0xff] %v26_v38  ;;  %v6645_v51 = vld [vmem:[%s8263_s1 + $0xa28] sm:$0xff] }
 0x121   :  { %4204 = vmatpush.bf16.msra.mxu3 %v6600_v53  ;;  %4166 = vmatmul.bf16.vlgmr.msra.gmra.mxu0 %v970_v58  ;;  %v3973_v13 = vadd.f32 %v3972_v10, %v3960_v7  ;;  %v6653_v52 = vld [vmem:[%s8263_s1 + $0xa68] sm:$0xff]  ;;  %v6652_v58 = vld [vmem:[%s8263_s1 + $0xa60] sm:$0xff] }
 0x122   :  { %4210 = vmatpush.bf16.msrb.mxu0 %v6615_v54  ;;  %4179 = vmatmul.bf16.vlgmr.msra.gmra.mxu1 %v971_v60  ;;  %v6661_v53 = vld [vmem:[%s8263_s1 + $0xaa8] sm:$0xff]  ;;  %v6660_v60 = vld [vmem:[%s8263_s1 + $0xaa0] sm:$0xff] }
 0x123   :  { %4223 = vmatpush.bf16.msrb.mxu1 %v6623_v55  ;;  %4192 = vmatmul.bf16.vlgmr.msra.gmra.mxu2 %v972_v59  ;;  %v6669_v54 = vld [vmem:[%s8263_s1 + $0xae8] sm:$0xff] }
 0x124   :  { %4236 = vmatpush.bf16.msrb.mxu2 %v6631_v56  ;;  %4205 = vmatmul.bf16.vlgmr.msra.gmra.mxu3 %v973_v61  ;;  %v6668_v61 = vld [vmem:[%s8263_s1 + $0xae0] sm:$0xff]  ;;  %v6701_v38 = vld [vmem:[%s8263_s1 + $0xbe8] sm:$0xff] }
 0x125   :  { %4249 = vmatpush.bf16.msrb.mxu3 %v6639_v57  ;;  %v6644_v57 = vld [vmem:[%s8263_s1 + $0xa20] sm:$0xff] }
 0x126   :  { %4211 = vmatpush.bf16.msrb.mxu0 %v6614_v62  ;;  %v3985_v18 = vpop.f32.mrf.mxu2  ;;  %v3961_v21 = vpop.f32.mrf.mxu0 }
 0x127   :  { %4224 = vmatpush.bf16.msrb.mxu1 %v6622_v63  ;;  %v3986_v19 = vadd.f32 %v3985_v18, %v3973_v13  ;;  %v3998_v20 = vpop.f32.mrf.mxu3  ;;  %v3974_v25 = vpop.f32.mrf.mxu1  ;;  %v6643_v63 = vld [vmem:[%s8263_s1 + $0xa18] sm:$0xff]  ;;  %v6641_v13 = vld [vmem:[%s8263_s1 + $0xa08] sm:$0xff]  ;;  %v6656_v21 = vld [vmem:[%s8263_s1 + $0xa80] sm:$0xff] }
 0x128   :  { %4237 = vmatpush.bf16.msrb.mxu2 %v6630_v0  ;;  %v6651_v0 = vld [vmem:[%s8263_s1 + $0xa58] sm:$0xff] }
 0x129   :  { %4250 = vmatpush.bf16.msrb.mxu3 %v6638_v1  ;;  %v7776_v22 = vadd.f32 %v3998_v20, %v3986_v19  ;;  %v6659_v1 = vld [vmem:[%s8263_s1 + $0xa98] sm:$0xff]  ;;  %v6640_v19 = vld [vmem:[%s8263_s1 + $0xa00] sm:$0xff] }
 0x12a   :  { %4212 = vmatpush.bf16.msrb.mxu0 %v6613_v2  ;;  %v6667_v2 = vld [vmem:[%s8263_s1 + $0xad8] sm:$0xff]  ;;  %v6648_v20 = vld [vmem:[%s8263_s1 + $0xa40] sm:$0xff] }
 0x12b   :  { %4225 = vmatpush.bf16.msrb.mxu1 %v6621_v3  ;;  %v6695_v25 = vld [vmem:[%s8263_s1 + $0xbb8] sm:$0xff] }
 0x12c   :  { %4238 = vmatpush.bf16.msrb.mxu2 %v6629_v4 }
 0x12d   :  { %4251 = vmatpush.bf16.msrb.mxu3 %v6637_v5 }
 0x12e   :  { %4213 = vmatpush.bf16.msrb.mxu0 %v6612_v8  ;;  %v3987_v34 = vpop.f32.mrf.mxu2  ;;  %v6642_v8 = vld [vmem:[%s8263_s1 + $0xa10] sm:$0xff] }
 0x12f   :  { %4226 = vmatpush.bf16.msrb.mxu1 %v6620_v9  ;;  %v4000_v37 = vpop.f32.mrf.mxu3  ;;  %v6650_v9 = vld [vmem:[%s8263_s1 + $0xa50] sm:$0xff] }
 0x130   :  { %4239 = vmatpush.bf16.msrb.mxu2 %v6628_v11  ;;  %v6658_v11 = vld [vmem:[%s8263_s1 + $0xa90] sm:$0xff]  ;;  %v6693_v37 = vld [vmem:[%s8263_s1 + $0xba8] sm:$0xff] }
 0x131   :  { %4252 = vmatpush.bf16.msrb.mxu3 %v6636_v12  ;;  %v6666_v12 = vld [vmem:[%s8263_s1 + $0xad0] sm:$0xff] }
 0x132   :  { %4214 = vmatpush.bf16.msrb.mxu0 %v6611_v14  ;;  %v6649_v14 = vld [vmem:[%s8263_s1 + $0xa48] sm:$0xff]  ;;  %v6702_v34 = vld [vmem:[%s8263_s1 + $0xbf0] sm:$0xff] }
 0x133   :  { %4227 = vmatpush.bf16.msrb.mxu1 %v6619_v15  ;;  %v6657_v15 = vld [vmem:[%s8263_s1 + $0xa88] sm:$0xff] }
 0x134   :  { %4240 = vmatpush.bf16.msrb.mxu2 %v6627_v16  ;;  %v6665_v16 = vld [vmem:[%s8263_s1 + $0xac8] sm:$0xff] }
 0x135   :  { %4253 = vmatpush.bf16.msrb.mxu3 %v6635_v17 }
 0x136   :  { %4215 = vmatpush.bf16.msrb.mxu0 %v6610_v23  ;;  %v6679_v23 = vld [vmem:[%s8263_s1 + $0xb38] sm:$0xff] }
 0x137   :  { %4228 = vmatpush.bf16.msrb.mxu1 %v6618_v24  ;;  %v6687_v24 = vld [vmem:[%s8263_s1 + $0xb78] sm:$0xff] }
 0x138   :  { %4241 = vmatpush.bf16.msrb.mxu2 %v6626_v26  ;;  %v6703_v26 = vld [vmem:[%s8263_s1 + $0xbf8] sm:$0xff] }
 0x139   :  { %4254 = vmatpush.bf16.msrb.mxu3 %v6634_v27  ;;  %v980_v27 = vld [vmem:[#allocation1] sm:$0xff] }
 0x13a   :  { %4216 = vmatpush.bf16.msrb.mxu0 %v6609_v28  ;;  %v982_v28 = vld [vmem:[#allocation1 + $0x12] sm:$0xff] }
 0x13b   :  { %4229 = vmatpush.bf16.msrb.mxu1 %v6617_v29  ;;  %v981_v29 = vld [vmem:[#allocation1 + $0x9] sm:$0xff] }
 0x13c   :  { %4242 = vmatpush.bf16.msrb.mxu2 %v6625_v30  ;;  %v983_v30 = vld [vmem:[#allocation1 + $0x1b] sm:$0xff] }
 0x13d   :  { %4255 = vmatpush.bf16.msrb.mxu3 %v6633_v31  ;;  %v6678_v31 = vld [vmem:[%s8263_s1 + $0xb30] sm:$0xff] }
 0x13e   :  { %4217 = vmatpush.bf16.msrb.mxu0 %v6608_v39  ;;  %v4011_v55 = vpop.f32.mrf.mxu0 }
 0x13f   :  { %4230 = vmatpush.bf16.msrb.mxu1 %v6616_v40  ;;  %v4012_v56 = vadd.f32 %v4011_v55, %v7776_v22  ;;  %v4024_v59 = vpop.f32.mrf.mxu1  ;;  %v6664_v22 = vld [vmem:[%s8263_s1 + $0xac0] sm:$0xff] }
 0x140   :  { %4243 = vmatpush.bf16.msrb.mxu2 %v6624_v41  ;;  %v6676_v41 = vld [vmem:[%s8263_s1 + $0xb20] sm:$0xff] }
 0x141   :  { %4256 = vmatpush.bf16.msrb.mxu3 %v6632_v42  ;;  %4218 = vmatmul.bf16.vlgmr.msrb.gmra.mxu0 %v974_v32  ;;  %v4025_v62 = vadd.f32 %v4024_v59, %v4012_v56  ;;  %v6686_v32 = vld [vmem:[%s8263_s1 + $0xb70] sm:$0xff]  ;;  %v6684_v42 = vld [vmem:[%s8263_s1 + $0xb60] sm:$0xff] }
 0x142   :  { %4262 = vmatpush.bf16.msra.mxu0 %v6647_v43  ;;  %4231 = vmatmul.bf16.vlgmr.msrb.gmra.mxu1 %v975_v35  ;;  %v6677_v35 = vld [vmem:[%s8263_s1 + $0xb28] sm:$0xff]  ;;  %v6674_v56 = vld [vmem:[%s8263_s1 + $0xb10] sm:$0xff] }
 0x143   :  { %4275 = vmatpush.bf16.msra.mxu1 %v6655_v44  ;;  %4244 = vmatmul.bf16.vlgmr.msrb.gmra.mxu2 %v976_v33  ;;  %v6694_v33 = vld [vmem:[%s8263_s1 + $0xbb0] sm:$0xff]  ;;  %v6692_v44 = vld [vmem:[%s8263_s1 + $0xba0] sm:$0xff] }
 0x144   :  { %4288 = vmatpush.bf16.msra.mxu2 %v6663_v45  ;;  %4257 = vmatmul.bf16.vlgmr.msrb.gmra.mxu3 %v977_v36  ;;  %v6685_v36 = vld [vmem:[%s8263_s1 + $0xb68] sm:$0xff]  ;;  %v6700_v45 = vld [vmem:[%s8263_s1 + $0xbe0] sm:$0xff]  ;;  %v6690_v59 = vld [vmem:[%s8263_s1 + $0xb90] sm:$0xff] }
 0x145   :  { %4301 = vmatpush.bf16.msra.mxu3 %v6671_v46 }
 0x146   :  { %4263 = vmatpush.bf16.msra.mxu0 %v6646_v47  ;;  %v4037_v3 = vpop.f32.mrf.mxu2  ;;  %v4013_v6 = vpop.f32.mrf.mxu0  ;;  %v6675_v47 = vld [vmem:[%s8263_s1 + $0xb18] sm:$0xff] }
 0x147   :  { %4276 = vmatpush.bf16.msra.mxu1 %v6654_v48  ;;  %v4038_v4 = vadd.f32 %v4037_v3, %v4025_v62  ;;  %v4050_v5 = vpop.f32.mrf.mxu3  ;;  %v4026_v10 = vpop.f32.mrf.mxu1  ;;  %v6683_v48 = vld [vmem:[%s8263_s1 + $0xb58] sm:$0xff]  ;;  %v6681_v62 = vld [vmem:[%s8263_s1 + $0xb48] sm:$0xff] }
 0x148   :  { %4289 = vmatpush.bf16.msra.mxu2 %v6662_v49  ;;  %v6691_v49 = vld [vmem:[%s8263_s1 + $0xb98] sm:$0xff]  ;;  %v6688_v10 = vld [vmem:[%s8263_s1 + $0xb80] sm:$0xff] }
 0x149   :  { %4302 = vmatpush.bf16.msra.mxu3 %v6670_v50  ;;  %v4051_v7 = vadd.f32 %v4050_v5, %v4038_v4  ;;  %v6699_v50 = vld [vmem:[%s8263_s1 + $0xbd8] sm:$0xff]  ;;  %v985_v4 = vld [vmem:[#allocation1 + $0x2d] sm:$0xff] }
 0x14a   :  { %4264 = vmatpush.bf16.msra.mxu0 %v6645_v51  ;;  %v987_v5 = vld [vmem:[#allocation1 + $0x3f] sm:$0xff] }
 0x14b   :  { %4277 = vmatpush.bf16.msra.mxu1 %v6653_v52 }
 0x14c   :  { %4290 = vmatpush.bf16.msra.mxu2 %v6661_v53 }
 0x14d   :  { %4303 = vmatpush.bf16.msra.mxu3 %v6669_v54 }
 0x14e   :  { %4265 = vmatpush.bf16.msra.mxu0 %v6644_v57  ;;  %v4039_v17 = vpop.f32.mrf.mxu2  ;;  %v6682_v57 = vld [vmem:[%s8263_s1 + $0xb50] sm:$0xff] }
 0x14f   :  { %4278 = vmatpush.bf16.msra.mxu1 %v6652_v58  ;;  %v4052_v18 = vpop.f32.mrf.mxu3  ;;  %v6718_v17 = vld [vmem:[%s8263_s1 + $0xc70] sm:$0xff] }
 0x150   :  { %4291 = vmatpush.bf16.msra.mxu2 %v6660_v60  ;;  %v6698_v60 = vld [vmem:[%s8263_s1 + $0xbd0] sm:$0xff] }
 0x151   :  { %4304 = vmatpush.bf16.msra.mxu3 %v6668_v61  ;;  %v6673_v61 = vld [vmem:[%s8263_s1 + $0xb08] sm:$0xff]  ;;  %v6726_v18 = vld [vmem:[%s8263_s1 + $0xcb0] sm:$0xff] }
 0x152   :  { %4266 = vmatpush.bf16.msra.mxu0 %v6643_v63  ;;  %v6689_v63 = vld [vmem:[%s8263_s1 + $0xb88] sm:$0xff] }
 0x153   :  { %4279 = vmatpush.bf16.msra.mxu1 %v6651_v0  ;;  %v6697_v0 = vld [vmem:[%s8263_s1 + $0xbc8] sm:$0xff] }
 0x154   :  { %4292 = vmatpush.bf16.msra.mxu2 %v6659_v1  ;;  %v984_v1 = vld [vmem:[#allocation1 + $0x24] sm:$0xff] }
 0x155   :  { %4305 = vmatpush.bf16.msra.mxu3 %v6667_v2  ;;  %v986_v2 = vld [vmem:[#allocation1 + $0x36] sm:$0xff] }
 0x156   :  { %4267 = vmatpush.bf16.msra.mxu0 %v6642_v8  ;;  %v6672_v8 = vld [vmem:[%s8263_s1 + $0xb00] sm:$0xff] }
 0x157   :  { %4280 = vmatpush.bf16.msra.mxu1 %v6650_v9  ;;  %v6680_v9 = vld [vmem:[%s8263_s1 + $0xb40] sm:$0xff] }
 0x158   :  { %4293 = vmatpush.bf16.msra.mxu2 %v6658_v11  ;;  %v6696_v11 = vld [vmem:[%s8263_s1 + $0xbc0] sm:$0xff] }
 0x159   :  { %4306 = vmatpush.bf16.msra.mxu3 %v6666_v12  ;;  %v6711_v12 = vld [vmem:[%s8263_s1 + $0xc38] sm:$0xff] }
 0x15a   :  { %4268 = vmatpush.bf16.msra.mxu0 %v6641_v13  ;;  %v6719_v13 = vld [vmem:[%s8263_s1 + $0xc78] sm:$0xff] }
 0x15b   :  { %4281 = vmatpush.bf16.msra.mxu1 %v6649_v14  ;;  %v6727_v14 = vld [vmem:[%s8263_s1 + $0xcb8] sm:$0xff] }
 0x15c   :  { %4294 = vmatpush.bf16.msra.mxu2 %v6657_v15  ;;  %v6735_v15 = vld [vmem:[%s8263_s1 + $0xcf8] sm:$0xff] }
 0x15d   :  { %4307 = vmatpush.bf16.msra.mxu3 %v6665_v16  ;;  %v6710_v16 = vld [vmem:[%s8263_s1 + $0xc30] sm:$0xff] }
 0x15e   :  { %4269 = vmatpush.bf16.msra.mxu0 %v6640_v19  ;;  %v4063_v39 = vpop.f32.mrf.mxu0  ;;  %v6734_v19 = vld [vmem:[%s8263_s1 + $0xcf0] sm:$0xff] }
 0x15f   :  { %4282 = vmatpush.bf16.msra.mxu1 %v6648_v20  ;;  %v4064_v40 = vadd.f32 %v4063_v39, %v4051_v7  ;;  %v4076_v43 = vpop.f32.mrf.mxu1  ;;  %v27_v7 = vld [vmem:[%s8262_s0 + $0x30] sm:$0xff]  ;;  %v6709_v20 = vld [vmem:[%s8263_s1 + $0xc28] sm:$0xff] }
 0x160   :  { %4295 = vmatpush.bf16.msra.mxu2 %v6656_v21  ;;  %989 = vst [vmem:[#allocation1] ss:$9 sm:$0xff] %v27_v7  ;;  %v6717_v21 = vld [vmem:[%s8263_s1 + $0xc68] sm:$0xff] }
 0x161   :  { %4308 = vmatpush.bf16.msra.mxu3 %v6664_v22  ;;  %4270 = vmatmul.bf16.vlgmr.msra.gmra.mxu0 %v980_v27  ;;  %v4077_v46 = vadd.f32 %v4076_v43, %v4064_v40  ;;  %v6725_v22 = vld [vmem:[%s8263_s1 + $0xca8] sm:$0xff]  ;;  %v6716_v27 = vld [vmem:[%s8263_s1 + $0xc60] sm:$0xff] }
 0x162   :  { %4314 = vmatpush.bf16.msrb.mxu0 %v6679_v23  ;;  %4283 = vmatmul.bf16.vlgmr.msra.gmra.mxu1 %v981_v29  ;;  %v6733_v23 = vld [vmem:[%s8263_s1 + $0xce8] sm:$0xff]  ;;  %v6724_v29 = vld [vmem:[%s8263_s1 + $0xca0] sm:$0xff] }
 0x163   :  { %4327 = vmatpush.bf16.msrb.mxu1 %v6687_v24  ;;  %4296 = vmatmul.bf16.vlgmr.msra.gmra.mxu2 %v982_v28  ;;  %v6765_v7 = vld [vmem:[%s8263_s1 + $0xde8] sm:$0xff] }
 0x164   :  { %4340 = vmatpush.bf16.msrb.mxu2 %v6695_v25  ;;  %4309 = vmatmul.bf16.vlgmr.msra.gmra.mxu3 %v983_v30  ;;  %v6732_v30 = vld [vmem:[%s8263_s1 + $0xce0] sm:$0xff] }
 0x165   :  { %4353 = vmatpush.bf16.msrb.mxu3 %v6703_v26  ;;  %v6708_v26 = vld [vmem:[%s8263_s1 + $0xc20] sm:$0xff] }
 0x166   :  { %4315 = vmatpush.bf16.msrb.mxu0 %v6678_v31  ;;  %v4089_v51 = vpop.f32.mrf.mxu2  ;;  %v4065_v54 = vpop.f32.mrf.mxu0 }
 0x167   :  { %4328 = vmatpush.bf16.msrb.mxu1 %v6686_v32  ;;  %v4090_v52 = vadd.f32 %v4089_v51, %v4077_v46  ;;  %v4102_v53 = vpop.f32.mrf.mxu3  ;;  %v4078_v58 = vpop.f32.mrf.mxu1  ;;  %v6707_v32 = vld [vmem:[%s8263_s1 + $0xc18] sm:$0xff]  ;;  %v6705_v46 = vld [vmem:[%s8263_s1 + $0xc08] sm:$0xff]  ;;  %v6720_v54 = vld [vmem:[%s8263_s1 + $0xc80] sm:$0xff] }
 0x168   :  { %4341 = vmatpush.bf16.msrb.mxu2 %v6694_v33  ;;  %v6715_v33 = vld [vmem:[%s8263_s1 + $0xc58] sm:$0xff] }
 0x169   :  { %4354 = vmatpush.bf16.msrb.mxu3 %v6702_v34  ;;  %v7974_v55 = vadd.f32 %v4102_v53, %v4090_v52  ;;  %v6723_v34 = vld [vmem:[%s8263_s1 + $0xc98] sm:$0xff]  ;;  %v6704_v52 = vld [vmem:[%s8263_s1 + $0xc00] sm:$0xff] }
 0x16a   :  { %4316 = vmatpush.bf16.msrb.mxu0 %v6677_v35  ;;  %v6731_v35 = vld [vmem:[%s8263_s1 + $0xcd8] sm:$0xff]  ;;  %v6712_v53 = vld [vmem:[%s8263_s1 + $0xc40] sm:$0xff] }
 0x16b   :  { %4329 = vmatpush.bf16.msrb.mxu1 %v6685_v36  ;;  %v6759_v58 = vld [vmem:[%s8263_s1 + $0xdb8] sm:$0xff] }
 0x16c   :  { %4342 = vmatpush.bf16.msrb.mxu2 %v6693_v37 }
 0x16d   :  { %4355 = vmatpush.bf16.msrb.mxu3 %v6701_v38 }
 0x16e   :  { %4317 = vmatpush.bf16.msrb.mxu0 %v6676_v41  ;;  %v4091_v3 = vpop.f32.mrf.mxu2  ;;  %v6706_v41 = vld [vmem:[%s8263_s1 + $0xc10] sm:$0xff] }
 0x16f   :  { %4330 = vmatpush.bf16.msrb.mxu1 %v6684_v42  ;;  %v4104_v6 = vpop.f32.mrf.mxu3  ;;  %v6714_v42 = vld [vmem:[%s8263_s1 + $0xc50] sm:$0xff] }
 0x170   :  { %4343 = vmatpush.bf16.msrb.mxu2 %v6692_v44  ;;  %v6722_v44 = vld [vmem:[%s8263_s1 + $0xc90] sm:$0xff]  ;;  %v6757_v6 = vld [vmem:[%s8263_s1 + $0xda8] sm:$0xff] }
 0x171   :  { %4356 = vmatpush.bf16.msrb.mxu3 %v6700_v45  ;;  %v6730_v45 = vld [vmem:[%s8263_s1 + $0xcd0] sm:$0xff] }
 0x172   :  { %4318 = vmatpush.bf16.msrb.mxu0 %v6675_v47  ;;  %v6713_v47 = vld [vmem:[%s8263_s1 + $0xc48] sm:$0xff]  ;;  %v6766_v3 = vld [vmem:[%s8263_s1 + $0xdf0] sm:$0xff] }
 0x173   :  { %4331 = vmatpush.bf16.msrb.mxu1 %v6683_v48  ;;  %v6721_v48 = vld [vmem:[%s8263_s1 + $0xc88] sm:$0xff] }
 0x174   :  { %4344 = vmatpush.bf16.msrb.mxu2 %v6691_v49  ;;  %v6729_v49 = vld [vmem:[%s8263_s1 + $0xcc8] sm:$0xff] }
 0x175   :  { %4357 = vmatpush.bf16.msrb.mxu3 %v6699_v50 }
 0x176   :  { %4319 = vmatpush.bf16.msrb.mxu0 %v6674_v56  ;;  %v6743_v56 = vld [vmem:[%s8263_s1 + $0xd38] sm:$0xff] }
 0x177   :  { %4332 = vmatpush.bf16.msrb.mxu1 %v6682_v57  ;;  %v6751_v57 = vld [vmem:[%s8263_s1 + $0xd78] sm:$0xff] }
 0x178   :  { %4345 = vmatpush.bf16.msrb.mxu2 %v6690_v59  ;;  %v6767_v59 = vld [vmem:[%s8263_s1 + $0xdf8] sm:$0xff] }
 0x179   :  { %4358 = vmatpush.bf16.msrb.mxu3 %v6698_v60  ;;  %v990_v60 = vld [vmem:[#allocation1] sm:$0xff] }
 0x17a   :  { %4320 = vmatpush.bf16.msrb.mxu0 %v6673_v61  ;;  %v992_v61 = vld [vmem:[#allocation1 + $0x12] sm:$0xff] }
 0x17b   :  { %4333 = vmatpush.bf16.msrb.mxu1 %v6681_v62  ;;  %v991_v62 = vld [vmem:[#allocation1 + $0x9] sm:$0xff] }
 0x17c   :  { %4346 = vmatpush.bf16.msrb.mxu2 %v6689_v63  ;;  %v993_v63 = vld [vmem:[#allocation1 + $0x1b] sm:$0xff] }
 0x17d   :  { %4359 = vmatpush.bf16.msrb.mxu3 %v6697_v0  ;;  %v6742_v0 = vld [vmem:[%s8263_s1 + $0xd30] sm:$0xff] }
 0x17e   :  { %4321 = vmatpush.bf16.msrb.mxu0 %v6672_v8  ;;  %v4115_v24 = vpop.f32.mrf.mxu0 }
 0x17f   :  { %4334 = vmatpush.bf16.msrb.mxu1 %v6680_v9  ;;  %v4116_v25 = vadd.f32 %v4115_v24, %v7974_v55  ;;  %v4128_v28 = vpop.f32.mrf.mxu1  ;;  %v6728_v55 = vld [vmem:[%s8263_s1 + $0xcc0] sm:$0xff] }
 0x180   :  { %4347 = vmatpush.bf16.msrb.mxu2 %v6688_v10  ;;  %v6740_v10 = vld [vmem:[%s8263_s1 + $0xd20] sm:$0xff] }
 0x181   :  { %4360 = vmatpush.bf16.msrb.mxu3 %v6696_v11  ;;  %4322 = vmatmul.bf16.vlgmr.msrb.gmra.mxu0 %v984_v1  ;;  %v4129_v31 = vadd.f32 %v4128_v28, %v4116_v25  ;;  %v6750_v1 = vld [vmem:[%s8263_s1 + $0xd70] sm:$0xff]  ;;  %v6748_v11 = vld [vmem:[%s8263_s1 + $0xd60] sm:$0xff] }
 0x182   :  { %4366 = vmatpush.bf16.msra.mxu0 %v6711_v12  ;;  %4335 = vmatmul.bf16.vlgmr.msrb.gmra.mxu1 %v985_v4  ;;  %v6741_v4 = vld [vmem:[%s8263_s1 + $0xd28] sm:$0xff]  ;;  %v6738_v25 = vld [vmem:[%s8263_s1 + $0xd10] sm:$0xff] }
 0x183   :  { %4379 = vmatpush.bf16.msra.mxu1 %v6719_v13  ;;  %4348 = vmatmul.bf16.vlgmr.msrb.gmra.mxu2 %v986_v2  ;;  %v6758_v2 = vld [vmem:[%s8263_s1 + $0xdb0] sm:$0xff]  ;;  %v6756_v13 = vld [vmem:[%s8263_s1 + $0xda0] sm:$0xff] }
 0x184   :  { %4392 = vmatpush.bf16.msra.mxu2 %v6727_v14  ;;  %4361 = vmatmul.bf16.vlgmr.msrb.gmra.mxu3 %v987_v5  ;;  %v6749_v5 = vld [vmem:[%s8263_s1 + $0xd68] sm:$0xff]  ;;  %v6764_v14 = vld [vmem:[%s8263_s1 + $0xde0] sm:$0xff]  ;;  %v6754_v28 = vld [vmem:[%s8263_s1 + $0xd90] sm:$0xff] }
 0x185   :  { %4405 = vmatpush.bf16.msra.mxu3 %v6735_v15 }
 0x186   :  { %4367 = vmatpush.bf16.msra.mxu0 %v6710_v16  ;;  %v4141_v36 = vpop.f32.mrf.mxu2  ;;  %v4117_v39 = vpop.f32.mrf.mxu0  ;;  %v6739_v16 = vld [vmem:[%s8263_s1 + $0xd18] sm:$0xff] }
 0x187   :  { %4380 = vmatpush.bf16.msra.mxu1 %v6718_v17  ;;  %v4142_v37 = vadd.f32 %v4141_v36, %v4129_v31  ;;  %v4154_v38 = vpop.f32.mrf.mxu3  ;;  %v4130_v43 = vpop.f32.mrf.mxu1  ;;  %v6747_v17 = vld [vmem:[%s8263_s1 + $0xd58] sm:$0xff]  ;;  %v6745_v31 = vld [vmem:[%s8263_s1 + $0xd48] sm:$0xff]  ;;  %v6736_v36 = vld [vmem:[%s8263_s1 + $0xd00] sm:$0xff] }
 0x188   :  { %4393 = vmatpush.bf16.msra.mxu2 %v6726_v18  ;;  %v6755_v18 = vld [vmem:[%s8263_s1 + $0xd98] sm:$0xff]  ;;  %v6760_v39 = vld [vmem:[%s8263_s1 + $0xdc0] sm:$0xff] }
 0x189   :  { %4406 = vmatpush.bf16.msra.mxu3 %v6734_v19  ;;  %v4155_v40 = vadd.f32 %v4154_v38, %v4142_v37  ;;  %v6763_v19 = vld [vmem:[%s8263_s1 + $0xdd8] sm:$0xff]  ;;  %v6744_v37 = vld [vmem:[%s8263_s1 + $0xd40] sm:$0xff] }
 0x18a   :  { %4368 = vmatpush.bf16.msra.mxu0 %v6709_v20  ;;  %v6752_v38 = vld [vmem:[%s8263_s1 + $0xd80] sm:$0xff] }
 0x18b   :  { %4381 = vmatpush.bf16.msra.mxu1 %v6717_v21  ;;  %v997_v43 = vld [vmem:[#allocation1 + $0x3f] sm:$0xff] }
 0x18c   :  { %4394 = vmatpush.bf16.msra.mxu2 %v6725_v22 }
 0x18d   :  { %4407 = vmatpush.bf16.msra.mxu3 %v6733_v23 }
 0x18e   :  { %4369 = vmatpush.bf16.msra.mxu0 %v6708_v26  ;;  %v4143_v50 = vpop.f32.mrf.mxu2  ;;  %v6746_v26 = vld [vmem:[%s8263_s1 + $0xd50] sm:$0xff] }
 0x18f   :  { %4382 = vmatpush.bf16.msra.mxu1 %v6716_v27  ;;  %v4156_v51 = vpop.f32.mrf.mxu3 }
 0x190   :  { %4395 = vmatpush.bf16.msra.mxu2 %v6724_v29  ;;  %v6762_v29 = vld [vmem:[%s8263_s1 + $0xdd0] sm:$0xff] }
 0x191   :  { %4408 = vmatpush.bf16.msra.mxu3 %v6732_v30  ;;  %v6737_v30 = vld [vmem:[%s8263_s1 + $0xd08] sm:$0xff] }
 0x192   :  { %4370 = vmatpush.bf16.msra.mxu0 %v6707_v32  ;;  %v6753_v32 = vld [vmem:[%s8263_s1 + $0xd88] sm:$0xff] }
 0x193   :  { %4383 = vmatpush.bf16.msra.mxu1 %v6715_v33  ;;  %v6761_v33 = vld [vmem:[%s8263_s1 + $0xdc8] sm:$0xff] }
 0x194   :  { %4396 = vmatpush.bf16.msra.mxu2 %v6723_v34 }
 0x195   :  { %4409 = vmatpush.bf16.msra.mxu3 %v6731_v35 }
 0x196   :  { %4371 = vmatpush.bf16.msra.mxu0 %v6706_v41  ;;  %v995_v41 = vld [vmem:[#allocation1 + $0x2d] sm:$0xff] }
 0x197   :  { %4384 = vmatpush.bf16.msra.mxu1 %v6714_v42  ;;  %v996_v42 = vld [vmem:[#allocation1 + $0x36] sm:$0xff] }
 0x198   :  { %4397 = vmatpush.bf16.msra.mxu2 %v6722_v44 }
 0x199   :  { %4410 = vmatpush.bf16.msra.mxu3 %v6730_v45 }
 0x19a   :  { %4372 = vmatpush.bf16.msra.mxu0 %v6705_v46 }
 0x19b   :  { %4385 = vmatpush.bf16.msra.mxu1 %v6713_v47 }
 0x19c   :  { %4398 = vmatpush.bf16.msra.mxu2 %v6721_v48 }
 0x19d   :  { %4411 = vmatpush.bf16.msra.mxu3 %v6729_v49 }
 0x19e   :  { %4373 = vmatpush.bf16.msra.mxu0 %v6704_v52  ;;  %v4167_v8 = vpop.f32.mrf.mxu0 }
 0x19f   :  { %4386 = vmatpush.bf16.msra.mxu1 %v6712_v53  ;;  %v4168_v9 = vadd.f32 %v4167_v8, %v4155_v40  ;;  %v4180_v12 = vpop.f32.mrf.mxu1  ;;  %v994_v40 = vld [vmem:[#allocation1 + $0x24] sm:$0xff]  ;;  %v4486_v8 = vld [vmem:[%s8265_s3 + $0x78] sm:$0xff] }
 0x1a0   :  { %4399 = vmatpush.bf16.msra.mxu2 %v6720_v54 }
 0x1a1   :  { %4412 = vmatpush.bf16.msra.mxu3 %v6728_v55  ;;  %4374 = vmatmul.bf16.vlgmr.msra.gmra.mxu0 %v990_v60  ;;  %v4181_v15 = vadd.f32 %v4180_v12, %v4168_v9  ;;  %v4485_v9 = vld [vmem:[%s8265_s3 + $0x70] sm:$0xff]  ;;  %v4484_v12 = vld [vmem:[%s8265_s3 + $0x68] sm:$0xff] }
 0x1a2   :  { %4418 = vmatpush.bf16.msrb.mxu0 %v6743_v56  ;;  %4387 = vmatmul.bf16.vlgmr.msra.gmra.mxu1 %v991_v62 }
 0x1a3   :  { %4431 = vmatpush.bf16.msrb.mxu1 %v6751_v57  ;;  %4400 = vmatmul.bf16.vlgmr.msra.gmra.mxu2 %v992_v61 }
 0x1a4   :  { %4444 = vmatpush.bf16.msrb.mxu2 %v6759_v58  ;;  %4413 = vmatmul.bf16.vlgmr.msra.gmra.mxu3 %v993_v63 }
 0x1a5   :  { %4457 = vmatpush.bf16.msrb.mxu3 %v6767_v59 }
 0x1a6   :  { %4419 = vmatpush.bf16.msrb.mxu0 %v6742_v0  ;;  %v4193_v20 = vpop.f32.mrf.mxu2  ;;  %v4169_v23 = vpop.f32.mrf.mxu0 }
 0x1a7   :  { %4432 = vmatpush.bf16.msrb.mxu1 %v6750_v1  ;;  %v4194_v21 = vadd.f32 %v4193_v20, %v4181_v15  ;;  %v4206_v22 = vpop.f32.mrf.mxu3  ;;  %v4182_v27 = vpop.f32.mrf.mxu1  ;;  %v4478_v20 = vld [vmem:[%s8265_s3 + $0x38] sm:$0xff] }
 0x1a8   :  { %4445 = vmatpush.bf16.msrb.mxu2 %v6758_v2  ;;  %v4473_v27 = vld [vmem:[%s8265_s3 + $0x10] sm:$0xff] }
 0x1a9   :  { %4458 = vmatpush.bf16.msrb.mxu3 %v6766_v3  ;;  %v4207_v24 = vadd.f32 %v4206_v22, %v4194_v21  ;;  %v4477_v21 = vld [vmem:[%s8265_s3 + $0x30] sm:$0xff]  ;;  %v4476_v22 = vld [vmem:[%s8265_s3 + $0x28] sm:$0xff] }
 0x1aa   :  { %4420 = vmatpush.bf16.msrb.mxu0 %v6741_v4 }
 0x1ab   :  { %4433 = vmatpush.bf16.msrb.mxu1 %v6749_v5 }
 0x1ac   :  { %4446 = vmatpush.bf16.msrb.mxu2 %v6757_v6 }
 0x1ad   :  { %4459 = vmatpush.bf16.msrb.mxu3 %v6765_v7 }
 0x1ae   :  { %4421 = vmatpush.bf16.msrb.mxu0 %v6740_v10  ;;  %v4195_v34 = vpop.f32.mrf.mxu2 }
 0x1af   :  { %4434 = vmatpush.bf16.msrb.mxu1 %v6748_v11  ;;  %v4208_v35 = vpop.f32.mrf.mxu3  ;;  %v4471_v34 = vld [vmem:[%s8265_s3] sm:$0xff] }
 0x1b0   :  { %4447 = vmatpush.bf16.msrb.mxu2 %v6756_v13  ;;  %v4483_v13 = vld [vmem:[%s8265_s3 + $0x60] sm:$0xff] }
 0x1b1   :  { %4460 = vmatpush.bf16.msrb.mxu3 %v6764_v14  ;;  %v4482_v14 = vld [vmem:[%s8265_s3 + $0x58] sm:$0xff] }
 0x1b2   :  { %4422 = vmatpush.bf16.msrb.mxu0 %v6739_v16 }
 0x1b3   :  { %4435 = vmatpush.bf16.msrb.mxu1 %v6747_v17  ;;  %v4481_v17 = vld [vmem:[%s8265_s3 + $0x50] sm:$0xff] }
 0x1b4   :  { %4448 = vmatpush.bf16.msrb.mxu2 %v6755_v18  ;;  %v4480_v18 = vld [vmem:[%s8265_s3 + $0x48] sm:$0xff] }
 0x1b5   :  { %4461 = vmatpush.bf16.msrb.mxu3 %v6763_v19  ;;  %v4479_v19 = vld [vmem:[%s8265_s3 + $0x40] sm:$0xff] }
 0x1b6   :  { %4423 = vmatpush.bf16.msrb.mxu0 %v6738_v25 }
 0x1b7   :  { %4436 = vmatpush.bf16.msrb.mxu1 %v6746_v26  ;;  %v4474_v26 = vld [vmem:[%s8265_s3 + $0x18] sm:$0xff] }
 0x1b8   :  { %4449 = vmatpush.bf16.msrb.mxu2 %v6754_v28 }
 0x1b9   :  { %4462 = vmatpush.bf16.msrb.mxu3 %v6762_v29 }
 0x1ba   :  { %4424 = vmatpush.bf16.msrb.mxu0 %v6737_v30 }
 0x1bb   :  { %4437 = vmatpush.bf16.msrb.mxu1 %v6745_v31  ;;  %v4472_v31 = vld [vmem:[%s8265_s3 + $0x8] sm:$0xff] }
 0x1bc   :  { %4450 = vmatpush.bf16.msrb.mxu2 %v6753_v32 }
 0x1bd   :  { %4463 = vmatpush.bf16.msrb.mxu3 %v6761_v33 }
 0x1be   :  { %4425 = vmatpush.bf16.msrb.mxu0 %v6736_v36  ;;  %v4219_v44 = vpop.f32.mrf.mxu0 }
 0x1bf   :  { %4438 = vmatpush.bf16.msrb.mxu1 %v6744_v37  ;;  %v4220_v45 = vadd.f32 %v4219_v44, %v4207_v24  ;;  %v4232_v46 = vpop.f32.mrf.mxu1  ;;  %v4475_v24 = vld [vmem:[%s8265_s3 + $0x20] sm:$0xff] }
 0x1c0   :  { %4451 = vmatpush.bf16.msrb.mxu2 %v6752_v38 }
 0x1c1   :  { %4464 = vmatpush.bf16.msrb.mxu3 %v6760_v39  ;;  %4426 = vmatmul.bf16.vlgmr.msrb.gmra.mxu0 %v994_v40  ;;  %v4233_v47 = vadd.f32 %v4232_v46, %v4220_v45 }
 0x1c2   :  { %4439 = vmatmul.bf16.vlgmr.msrb.gmra.mxu1 %v995_v41  ;;  %4491 = vmatpush.msra.mxu0 %v4486_v8 }
 0x1c3   :  { %4452 = vmatmul.bf16.vlgmr.msrb.gmra.mxu2 %v996_v42 }
 0x1c4   :  { %4465 = vmatmul.bf16.vlgmr.msrb.gmra.mxu3 %v997_v43  ;;  %4492 = vmatpush.msra.mxu0 %v4485_v9 }
 0x1c6   :  { %v4245_v48 = vpop.f32.mrf.mxu2  ;;  %v4221_v51 = vpop.f32.mrf.mxu0  ;;  %4493 = vmatpush.msra.mxu0 %v4484_v12 }
 0x1c7   :  { %v4246_v49 = vadd.f32 %v4245_v48, %v4233_v47  ;;  %v4258_v50 = vpop.f32.mrf.mxu3  ;;  %v4234_v53 = vpop.f32.mrf.mxu1 }
 0x1c8   :  { %4494 = vmatpush.msra.mxu0 %v4483_v13 }
 0x1c9   :  { %v4259_v52 = vadd.f32 %v4258_v50, %v4246_v49 }
 0x1ca   :  { %4495 = vmatpush.msra.mxu0 %v4482_v14 }
 0x1cc   :  { %4496 = vmatpush.msra.mxu0 %v4481_v17 }
 0x1ce   :  { %v4247_v54 = vpop.f32.mrf.mxu2  ;;  %4497 = vmatpush.msra.mxu0 %v4480_v18 }
 0x1cf   :  { %v4260_v55 = vpop.f32.mrf.mxu3 }
 0x1d0   :  { %4498 = vmatpush.msra.mxu0 %v4479_v19 }
 0x1d2   :  { %4499 = vmatpush.msra.mxu0 %v4478_v20 }
 0x1d4   :  { %4500 = vmatpush.msra.mxu0 %v4477_v21 }
 0x1d6   :  { %4501 = vmatpush.msra.mxu0 %v4476_v22 }
 0x1d8   :  { %4502 = vmatpush.msra.mxu0 %v4475_v24 }
 0x1da   :  { %4503 = vmatpush.msra.mxu0 %v4474_v26 }
 0x1dc   :  { %4504 = vmatpush.msra.mxu0 %v4473_v27 }
 0x1de   :  { %v4271_v56 = vpop.f32.mrf.mxu0  ;;  %4505 = vmatpush.msra.mxu0 %v4472_v31 }
 0x1df   :  { %v4272_v57 = vadd.f32 %v4271_v56, %v4259_v52  ;;  %v4284_v58 = vpop.f32.mrf.mxu1 }
 0x1e0   :  { %4506 = vmatpush.msra.mxu0 %v4471_v34 }
 0x1e1   :  { %v4285_v59 = vadd.f32 %v4284_v58, %v4272_v57  ;;  %v6770_v57 = vld [vmem:[%s8266_s4] ss:$0 sm:$0xff] }
 0x1e6   :  { %v4297_v60 = vpop.f32.mrf.mxu2  ;;  %v4273_v63 = vpop.f32.mrf.mxu0 }
 0x1e7   :  { %v4298_v61 = vadd.f32 %v4297_v60, %v4285_v59  ;;  %v4310_v62 = vpop.f32.mrf.mxu3  ;;  %v4286_v1 = vpop.f32.mrf.mxu1 }
 0x1e9   :  { %v4311_v0 = vadd.f32 %v4310_v62, %v4298_v61 }
 0x1ee   :  { %v4299_v2 = vpop.f32.mrf.mxu2 }
 0x1ef   :  { %v4312_v3 = vpop.f32.mrf.mxu3 }
 0x1fe   :  { %v4323_v4 = vpop.f32.mrf.mxu0 }
 0x1ff   :  { %v4336_v5 = vpop.f32.mrf.mxu1  ;;  %v4324_v29 = vadd.f32 %v4323_v4, %v4311_v0 }
 0x201   :  { %v4337_v35 = vadd.f32 %v4336_v5, %v4324_v29 }
 0x206   :  { %v4349_v6 = vpop.f32.mrf.mxu2  ;;  %v4325_v10 = vpop.f32.mrf.mxu0 }
 0x207   :  { %v4362_v7 = vpop.f32.mrf.mxu3  ;;  %v4338_v11 = vpop.f32.mrf.mxu1  ;;  %v4350_v36 = vadd.f32 %v4349_v6, %v4337_v35 }
 0x209   :  { %v4363_v39 = vadd.f32 %v4362_v7, %v4350_v36 }
 0x20e   :  { %v4351_v15 = vpop.f32.mrf.mxu2 }
 0x20f   :  { %v4364_v16 = vpop.f32.mrf.mxu3 }
 0x21e   :  { %v4375_v23 = vpop.f32.mrf.mxu0 }
 0x21f   :  { %v4388_v25 = vpop.f32.mrf.mxu1  ;;  %v4376_v40 = vadd.f32 %v4375_v23, %v4363_v39 }
 0x221   :  { %v4389_v41 = vadd.f32 %v4388_v25, %v4376_v40 }
 0x226   :  { %v4401_v28 = vpop.f32.mrf.mxu2  ;;  %v4377_v32 = vpop.f32.mrf.mxu0 }
 0x227   :  { %v4414_v30 = vpop.f32.mrf.mxu3  ;;  %v4390_v33 = vpop.f32.mrf.mxu1  ;;  %v4402_v42 = vadd.f32 %v4401_v28, %v4389_v41 }
 0x229   :  { %v4415_v43 = vadd.f32 %v4414_v30, %v4402_v42 }
 0x22e   :  { %v4403_v37 = vpop.f32.mrf.mxu2 }
 0x22f   :  { %v4416_v38 = vpop.f32.mrf.mxu3 }
 0x23e   :  { %v4427_v44 = vpop.f32.mrf.mxu0 }
 0x23f   :  { %v4440_v45 = vpop.f32.mrf.mxu1  ;;  %v4428_v46 = vadd.f32 %v4427_v44, %v4415_v43 }
 0x241   :  { %v4441_v47 = vadd.f32 %v4440_v45, %v4428_v46 }
 0x246   :  { %v4453_v48 = vpop.f32.mrf.mxu2  ;;  %v4429_v51 = vpop.f32.mrf.mxu0 }
 0x247   :  { %v4466_v49 = vpop.f32.mrf.mxu3  ;;  %v4454_v50 = vadd.f32 %v4453_v48, %v4441_v47  ;;  %v4442_v52 = vpop.f32.mrf.mxu1 }
 0x249   :  { %v4467_v53 = vadd.f32 %v4466_v49, %v4454_v50 }
 0x24b   :  { %v4470_v54 = vmax.f32 %v4467_v53, 0.0 }
 0x24d   :  { %4507 = vmatmul.f32.vlgmr.msra.gmra.mxu0 %v4470_v54 }
 0x24e   :  { %v4455_v55 = vpop.f32.mrf.mxu2 }
 0x24f   :  { %v4468_v56 = vpop.f32.mrf.mxu3 }
 0x2ca   :  { %v4508_v58 = vpop.f32.mrf.mxu0 }
 0x2cb   :  { %v4509_v59 = vadd.f32 %v6770_v57, %v4508_v58 }
 0x2cd   :  { %4511 = vst [vmem:[#allocation2] sm:$0x3] %v4509_v59 }
 0x2ce   :  { %4522 = dma.vmem_to_hbm [thread:$0]  %s4518_s8, 32, %s4520_s10, [#allocation3]  }
 0x2cf   :  { %6795 = dma.done.wait [#allocation3], 32  }
 0x2d0   :  { %6796 = vsyncadd [#allocation3], 4294967264 }
 0x2d1   :  { %4527 = vsyncpa [#allocation3], 1 }

</bundles_post_ra>
